<compile_context>
chip_gen: v6e
topology: v6e:2x2x1
jax: 0.10.0
libtpu: 0.0.40
codegen_flags: <defaults>
</compile_context>

<pallas_src>
import functools

import jax
import jax.numpy as jnp
import numpy as np
from jax import lax
from jax.experimental import pallas as pl
from jax.experimental.pallas import tpu as pltpu


def gpn_kernel(vnr_ref, static_ref, logmask_ref,
               w_ih_t_ref, w_hh_t_ref, b_ih_ref, b_hh_ref,
               w1_ref, w2_ref, v_ref, out_ref, *, B, H, S, T):
    """Whole GraphPinterNet forward in one kernel invocation.

    vnr_ref     : (T*B, H)   step-major vnr embeddings (row = t*B + b)
    static_ref  : (B, H, S)  encoder states (resident, loaded once)
    logmask_ref : (B, T*S)   log(mask) already in output layout
    out_ref     : (B, T*S)   == probs_mask.view(B, -1)
    """
    # ---- Phase 0: step-independent projections (hoisted out of the loop) ----
    # GRU input projection for ALL steps at once: (T*B, 3H).
    gi_all = jnp.dot(vnr_ref[...], w_ih_t_ref[...],
                     preferred_element_type=jnp.float32) + b_ih_ref[...]
    w_hh_t = w_hh_t_ref[...]           # load once, reused every step
    b_hh = b_hh_ref[...]

    # ---- Phase 1: sequential GRU recurrence (only gh depends on h) ----------
    # T is small and static -> fully unrolled straight-line code; per-step live
    # state is a couple of vregs, so no live-range pressure.
    h = jnp.zeros((B, H), jnp.float32)          # GraphPinterNet.x0 is zeros
    hs = []
    for t in range(T):
        gi = gi_all[t * B:(t + 1) * B, :]                               # (B, 3H)
        gh = jnp.dot(h, w_hh_t, preferred_element_type=jnp.float32) + b_hh
        r = jax.nn.sigmoid(gi[:, 0:H] + gh[:, 0:H])
        z = jax.nn.sigmoid(gi[:, H:2 * H] + gh[:, H:2 * H])
        n = jnp.tanh(gi[:, 2 * H:3 * H] + r * gh[:, 2 * H:3 * H])
        h = (1.0 - z) * n + z * h
        hs.append(h)

    # ---- Phase 2: attention for all (batch, step) pairs, lane-dense ---------
    h_all = jnp.concatenate(hs, axis=0)          # (T*B, H), row = t*B + b
    # t2t[:, t*B + b] = W2 @ h_{t,b}   (single NT matmul, no explicit transpose)
    t2t = lax.dot_general(w2_ref[...], h_all, (((1,), (1,)), ((), ())),
                          preferred_element_type=jnp.float32)            # (H, T*B)

    rows = []
    for b in range(B):                           # B is tiny: unrolled
        # loop-invariant static term, computed exactly once per batch
        t1_b = jnp.dot(w1_ref[...], static_ref[b],
                       preferred_element_type=jnp.float32)               # (H, S)
        # tile static term over steps / broadcast decoder term over nodes,
        # giving one lane-dense (H, T*S) tanh operand per batch
        t1_rep = jnp.concatenate([t1_b] * T, axis=1)                     # (H, T*S)
        t2_rep = jnp.concatenate(
            [jnp.broadcast_to(t2t[:, t * B + b:t * B + b + 1], (H, S))
             for t in range(T)], axis=1)                                 # (H, T*S)
        u_b = jnp.tanh(t1_rep + t2_rep)                                  # (H, T*S)
        rows.append(jnp.dot(v_ref[...], u_b,
                            preferred_element_type=jnp.float32))         # (1, T*S)

    # single lane-dense store in the final output layout
    out_ref[...] = jnp.concatenate(rows, axis=0) + logmask_ref[...]      # (B, T*S)


def graph_pointer_net(vnr_hidden, static_hidden, vnr_vnf, net_vnf, params):
    """JAX wrapper mirroring GraphPinterNet.forward."""
    B, H, T = vnr_hidden.shape
    S = static_hidden.shape[2]

    # glue: step-major flattening so the GRU input projection is one matmul
    vnr_flat = jnp.transpose(vnr_hidden, (2, 0, 1)).reshape(T * B, H)
    vnr_flat = vnr_flat.astype(jnp.float32)

    # glue: mask[b, t, s] = net_vnf[b, s, vnr_vnf[b, t]]  (indexing, not hot path)
    mask = jax.vmap(lambda nv, idx: nv[:, idx].T)(net_vnf, vnr_vnf)      # (B, T, S)
    log_mask = jnp.log(mask.astype(jnp.float32)).reshape(B, T * S)       # output layout

    # pre-transpose / split weights so the kernel only does plain matmuls
    w_ih_t = params["W_ih"].T          # (H, 3H)
    w_hh_t = params["W_hh"].T          # (H, 3H)
    b_ih = params["b_ih"][None, :]     # (1, 3H)
    b_hh = params["b_hh"][None, :]     # (1, 3H)
    w1 = params["W_attn"][:, :H]       # (H, H)   multiplies static part
    w2 = params["W_attn"][:, H:]       # (H, H)   multiplies decoder part
    v_row = params["v_attn"][None, :]  # (1, H)

    kernel = functools.partial(gpn_kernel, B=B, H=H, S=S, T=T)

    grid_spec = pltpu.PrefetchScalarGridSpec(
        num_scalar_prefetch=0,
        grid=(1,),                                     # single invocation
        in_specs=[
            pl.BlockSpec((T * B, H), lambda i: (0, 0)),      # vnr (all steps)
            pl.BlockSpec((B, H, S), lambda i: (0, 0, 0)),    # static (resident)
            pl.BlockSpec((B, T * S), lambda i: (0, 0)),      # log mask
            pl.BlockSpec((H, 3 * H), lambda i: (0, 0)),
            pl.BlockSpec((H, 3 * H), lambda i: (0, 0)),
            pl.BlockSpec((1, 3 * H), lambda i: (0, 0)),
            pl.BlockSpec((1, 3 * H), lambda i: (0, 0)),
            pl.BlockSpec((H, H), lambda i: (0, 0)),
            pl.BlockSpec((H, H), lambda i: (0, 0)),
            pl.BlockSpec((1, H), lambda i: (0, 0)),
        ],
        out_specs=pl.BlockSpec((B, T * S), lambda i: (0, 0)),
    )

    out = pl.pallas_call(
        kernel,
        out_shape=jax.ShapeDtypeStruct((B, T * S), jnp.float32),
        grid_spec=grid_spec,
        compiler_params=pltpu.CompilerParams(
            dimension_semantics=("arbitrary",)),
    )(vnr_flat, static_hidden.astype(jnp.float32), log_mask,
      w_ih_t, w_hh_t, b_ih, b_hh, w1, w2, v_row)

    # already probs_mask.view(batch_size, -1)
    return out


def reference(vnr_hidden, static_hidden, vnr_vnf, net_vnf, p):
    """Plain-JAX reproduction of the PyTorch forward (for verification)."""
    B, H, T = vnr_hidden.shape
    S = static_hidden.shape[2]
    h = jnp.zeros((B, H), jnp.float32)
    outs = []
    for i in range(T):
        x = vnr_hidden[:, :, i]
        gi = x @ p["W_ih"].T + p["b_ih"]
        gh = h @ p["W_hh"].T + p["b_hh"]
        r = jax.nn.sigmoid(gi[:, :H] + gh[:, :H])
        z = jax.nn.sigmoid(gi[:, H:2 * H] + gh[:, H:2 * H])
        n = jnp.tanh(gi[:, 2 * H:] + r * gh[:, 2 * H:])
        h = (1 - z) * n + z * h
        cat = jnp.concatenate(
            [static_hidden, jnp.broadcast_to(h[:, :, None], (B, H, S))], axis=1)
        t = jnp.tanh(jnp.einsum("hk,bks->bhs", p["W_attn"], cat))
        attn = jnp.einsum("h,bhs->bs", p["v_attn"], t)
        mask = jax.vmap(lambda nv, idx: nv[:, idx])(net_vnf, vnr_vnf[:, i])
        outs.append(attn + jnp.log(mask.astype(jnp.float32)))
    return jnp.stack(outs, axis=1).reshape(B, T * S)


def make_params(key, hidden_size):
    H = hidden_size
    ks = jax.random.split(key, 6)
    k_gru = 1.0 / np.sqrt(H)
    xav = np.sqrt(6.0 / (H + 2 * H))
    return {
        # nn.GRU(hidden, hidden, 1) parameters (gate order r, z, n)
        "W_ih": jax.random.uniform(ks[0], (3 * H, H), jnp.float32, -k_gru, k_gru),
        "W_hh": jax.random.uniform(ks[1], (3 * H, H), jnp.float32, -k_gru, k_gru),
        "b_ih": jax.random.uniform(ks[2], (3 * H,), jnp.float32, -k_gru, k_gru),
        "b_hh": jax.random.uniform(ks[3], (3 * H,), jnp.float32, -k_gru, k_gru),
        # AttentionModule parameters (xavier-initialized in __init__)
        "W_attn": jax.random.uniform(ks[4], (H, 2 * H), jnp.float32, -xav, xav),
        "v_attn": jax.random.uniform(ks[5], (H,), jnp.float32, -xav, xav),
        # NOTE: PointerNet.v / PointerNet.W exist but are unused in forward.
    }


if __name__ == "__main__":
    B, H, S, T, N_VNF = 2, 32, 16, 8, 4   # batch, hidden, net nodes, vnr nodes, vnf types

    key = jax.random.PRNGKey(0)
    k1, k2, k3, k4, k5 = jax.random.split(key, 5)

    static_hidden = jax.random.normal(k1, (B, H, S), jnp.float32)
    vnr_hidden = jax.random.normal(k2, (B, H, T), jnp.float32)
    vnr_vnf = jax.random.randint(k3, (B, T), 0, N_VNF, jnp.int32)             # vnr_VNF
    net_vnf = jax.random.bernoulli(k4, 0.7, (B, S, N_VNF)).astype(jnp.int32)  # net_VNF

    params = make_params(k5, H)

    out = graph_pointer_net(vnr_hidden, static_hidden, vnr_vnf, net_vnf, params)
    out = jax.block_until_ready(out)

    ref = reference(vnr_hidden, static_hidden, vnr_vnf, net_vnf, params)
    assert out.shape == (B, T * S)
    np.testing.assert_allclose(np.asarray(out), np.asarray(ref), rtol=1e-5, atol=1e-5)

    print("KERNEL_OK")
</pallas_src>

<mosaic_0001>
module attributes {stable_mosaic.version = 11 : i64} {
  func.func @gpn_kernel(%arg0: i32, %arg1: memref<16x32xf32, #tpu.memory_space<vmem>>, %arg2: memref<2x32x16xf32, #tpu.memory_space<vmem>>, %arg3: memref<2x128xf32, #tpu.memory_space<vmem>>, %arg4: memref<32x96xf32, #tpu.memory_space<vmem>>, %arg5: memref<32x96xf32, #tpu.memory_space<vmem>>, %arg6: memref<1x96xf32, #tpu.memory_space<vmem>>, %arg7: memref<1x96xf32, #tpu.memory_space<vmem>>, %arg8: memref<32x32xf32, #tpu.memory_space<vmem>>, %arg9: memref<32x32xf32, #tpu.memory_space<vmem>>, %arg10: memref<1x32xf32, #tpu.memory_space<vmem>>, %arg11: memref<2x128xf32, #tpu.memory_space<vmem>>) attributes {dimension_semantics = [#tpu.dimension_semantics<arbitrary>], iteration_bounds = array<i64: 1>, scalar_prefetch = 0 : i64, scratch_operands = 0 : i64, tpu.core_type = #tpu.core_type<tc>, window_params = [{pipeline_mode = #tpu.pipeline_mode<synchronous>, transform_indices = @transform_0, window_bounds = array<i64: 16, 32>}, {pipeline_mode = #tpu.pipeline_mode<synchronous>, transform_indices = @transform_1, window_bounds = array<i64: 2, 32, 16>}, {pipeline_mode = #tpu.pipeline_mode<synchronous>, transform_indices = @transform_2, window_bounds = array<i64: 2, 128>}, {pipeline_mode = #tpu.pipeline_mode<synchronous>, transform_indices = @transform_3, window_bounds = array<i64: 32, 96>}, {pipeline_mode = #tpu.pipeline_mode<synchronous>, transform_indices = @transform_4, window_bounds = array<i64: 32, 96>}, {pipeline_mode = #tpu.pipeline_mode<synchronous>, transform_indices = @transform_5, window_bounds = array<i64: 1, 96>}, {pipeline_mode = #tpu.pipeline_mode<synchronous>, transform_indices = @transform_6, window_bounds = array<i64: 1, 96>}, {pipeline_mode = #tpu.pipeline_mode<synchronous>, transform_indices = @transform_7, window_bounds = array<i64: 32, 32>}, {pipeline_mode = #tpu.pipeline_mode<synchronous>, transform_indices = @transform_8, window_bounds = array<i64: 32, 32>}, {pipeline_mode = #tpu.pipeline_mode<synchronous>, transform_indices = @transform_9, window_bounds = array<i64: 1, 32>}, {pipeline_mode = #tpu.pipeline_mode<synchronous>, transform_indices = @transform_10, window_bounds = array<i64: 2, 128>}]} {
    %c0 = arith.constant 0 : index
    %c0_0 = arith.constant 0 : index
    %0 = vector.load %arg1[%c0, %c0_0] : memref<16x32xf32, #tpu.memory_space<vmem>>, vector<16x32xf32>
    %c0_1 = arith.constant 0 : index
    %c0_2 = arith.constant 0 : index
    %1 = vector.load %arg4[%c0_1, %c0_2] : memref<32x96xf32, #tpu.memory_space<vmem>>, vector<32x96xf32>
    %cst = arith.constant dense<0.000000e+00> : vector<16x96xf32>
    %2 = tpu.matmul %0, %1, %cst {dimension_numbers = #tpu.dot_dimension_numbers<[1], [0], [0], [1], [0, 0, 1, 1], [], []>} : vector<16x32xf32>, vector<32x96xf32>, vector<16x96xf32> -> vector<16x96xf32>
    %c0_3 = arith.constant 0 : index
    %c0_4 = arith.constant 0 : index
    %3 = vector.load %arg6[%c0_3, %c0_4] : memref<1x96xf32, #tpu.memory_space<vmem>>, vector<1x96xf32>
    %4 = vector.broadcast %3 : vector<1x96xf32> to vector<16x96xf32>
    %5 = arith.addf %2, %4 : vector<16x96xf32>
    %c0_5 = arith.constant 0 : index
    %c0_6 = arith.constant 0 : index
    %6 = vector.load %arg5[%c0_5, %c0_6] : memref<32x96xf32, #tpu.memory_space<vmem>>, vector<32x96xf32>
    %c0_7 = arith.constant 0 : index
    %c0_8 = arith.constant 0 : index
    %7 = vector.load %arg7[%c0_7, %c0_8] : memref<1x96xf32, #tpu.memory_space<vmem>>, vector<1x96xf32>
    %cst_9 = arith.constant 0.000000e+00 : f32
    %8 = vector.broadcast %cst_9 : f32 to vector<2x32xf32>
    %9 = vector.extract_strided_slice %5 {offsets = [0, 0], sizes = [2, 96], strides = [1, 1]} : vector<16x96xf32> to vector<2x96xf32>
    %cst_10 = arith.constant dense<0.000000e+00> : vector<2x96xf32>
    %10 = tpu.matmul %8, %6, %cst_10 {dimension_numbers = #tpu.dot_dimension_numbers<[1], [0], [0], [1], [0, 0, 1, 1], [], []>} : vector<2x32xf32>, vector<32x96xf32>, vector<2x96xf32> -> vector<2x96xf32>
    %11 = vector.broadcast %7 : vector<1x96xf32> to vector<2x96xf32>
    %12 = arith.addf %10, %11 : vector<2x96xf32>
    %13 = vector.extract_strided_slice %9 {offsets = [0, 0], sizes = [2, 32], strides = [1, 1]} : vector<2x96xf32> to vector<2x32xf32>
    %14 = vector.extract_strided_slice %12 {offsets = [0, 0], sizes = [2, 32], strides = [1, 1]} : vector<2x96xf32> to vector<2x32xf32>
    %15 = arith.addf %13, %14 : vector<2x32xf32>
    %16 = arith.negf %15 : vector<2x32xf32>
    %17 = math.exp %16 : vector<2x32xf32>
    %cst_11 = arith.constant 1.000000e+00 : f32
    %18 = vector.broadcast %cst_11 : f32 to vector<2x32xf32>
    %19 = arith.addf %18, %17 : vector<2x32xf32>
    %20 = arith.divf %18, %19 : vector<2x32xf32>
    %21 = vector.extract_strided_slice %9 {offsets = [0, 32], sizes = [2, 32], strides = [1, 1]} : vector<2x96xf32> to vector<2x32xf32>
    %22 = vector.extract_strided_slice %12 {offsets = [0, 32], sizes = [2, 32], strides = [1, 1]} : vector<2x96xf32> to vector<2x32xf32>
    %23 = arith.addf %21, %22 : vector<2x32xf32>
    %24 = arith.negf %23 : vector<2x32xf32>
    %25 = math.exp %24 : vector<2x32xf32>
    %cst_12 = arith.constant 1.000000e+00 : f32
    %26 = vector.broadcast %cst_12 : f32 to vector<2x32xf32>
    %27 = arith.addf %26, %25 : vector<2x32xf32>
    %28 = arith.divf %26, %27 : vector<2x32xf32>
    %29 = vector.extract_strided_slice %9 {offsets = [0, 64], sizes = [2, 32], strides = [1, 1]} : vector<2x96xf32> to vector<2x32xf32>
    %30 = vector.extract_strided_slice %12 {offsets = [0, 64], sizes = [2, 32], strides = [1, 1]} : vector<2x96xf32> to vector<2x32xf32>
    %31 = arith.mulf %20, %30 : vector<2x32xf32>
    %32 = arith.addf %29, %31 : vector<2x32xf32>
    %33 = math.tanh %32 : vector<2x32xf32>
    %cst_13 = arith.constant 1.000000e+00 : f32
    %34 = vector.broadcast %cst_13 : f32 to vector<2x32xf32>
    %35 = arith.subf %34, %28 : vector<2x32xf32>
    %36 = arith.mulf %35, %33 : vector<2x32xf32>
    %37 = arith.mulf %28, %8 : vector<2x32xf32>
    %38 = arith.addf %36, %37 : vector<2x32xf32>
    %39 = vector.extract_strided_slice %5 {offsets = [2, 0], sizes = [2, 96], strides = [1, 1]} : vector<16x96xf32> to vector<2x96xf32>
    %cst_14 = arith.constant dense<0.000000e+00> : vector<2x96xf32>
    %40 = tpu.matmul %38, %6, %cst_14 {dimension_numbers = #tpu.dot_dimension_numbers<[1], [0], [0], [1], [0, 0, 1, 1], [], []>} : vector<2x32xf32>, vector<32x96xf32>, vector<2x96xf32> -> vector<2x96xf32>
    %41 = vector.broadcast %7 : vector<1x96xf32> to vector<2x96xf32>
    %42 = arith.addf %40, %41 : vector<2x96xf32>
    %43 = vector.extract_strided_slice %39 {offsets = [0, 0], sizes = [2, 32], strides = [1, 1]} : vector<2x96xf32> to vector<2x32xf32>
    %44 = vector.extract_strided_slice %42 {offsets = [0, 0], sizes = [2, 32], strides = [1, 1]} : vector<2x96xf32> to vector<2x32xf32>
    %45 = arith.addf %43, %44 : vector<2x32xf32>
    %46 = arith.negf %45 : vector<2x32xf32>
    %47 = math.exp %46 : vector<2x32xf32>
    %cst_15 = arith.constant 1.000000e+00 : f32
    %48 = vector.broadcast %cst_15 : f32 to vector<2x32xf32>
    %49 = arith.addf %48, %47 : vector<2x32xf32>
    %50 = arith.divf %48, %49 : vector<2x32xf32>
    %51 = vector.extract_strided_slice %39 {offsets = [0, 32], sizes = [2, 32], strides = [1, 1]} : vector<2x96xf32> to vector<2x32xf32>
    %52 = vector.extract_strided_slice %42 {offsets = [0, 32], sizes = [2, 32], strides = [1, 1]} : vector<2x96xf32> to vector<2x32xf32>
    %53 = arith.addf %51, %52 : vector<2x32xf32>
    %54 = arith.negf %53 : vector<2x32xf32>
    %55 = math.exp %54 : vector<2x32xf32>
    %cst_16 = arith.constant 1.000000e+00 : f32
    %56 = vector.broadcast %cst_16 : f32 to vector<2x32xf32>
    %57 = arith.addf %56, %55 : vector<2x32xf32>
    %58 = arith.divf %56, %57 : vector<2x32xf32>
    %59 = vector.extract_strided_slice %39 {offsets = [0, 64], sizes = [2, 32], strides = [1, 1]} : vector<2x96xf32> to vector<2x32xf32>
    %60 = vector.extract_strided_slice %42 {offsets = [0, 64], sizes = [2, 32], strides = [1, 1]} : vector<2x96xf32> to vector<2x32xf32>
    %61 = arith.mulf %50, %60 : vector<2x32xf32>
    %62 = arith.addf %59, %61 : vector<2x32xf32>
    %63 = math.tanh %62 : vector<2x32xf32>
    %cst_17 = arith.constant 1.000000e+00 : f32
    %64 = vector.broadcast %cst_17 : f32 to vector<2x32xf32>
    %65 = arith.subf %64, %58 : vector<2x32xf32>
    %66 = arith.mulf %65, %63 : vector<2x32xf32>
    %67 = arith.mulf %58, %38 : vector<2x32xf32>
    %68 = arith.addf %66, %67 : vector<2x32xf32>
    %69 = vector.extract_strided_slice %5 {offsets = [4, 0], sizes = [2, 96], strides = [1, 1]} : vector<16x96xf32> to vector<2x96xf32>
    %cst_18 = arith.constant dense<0.000000e+00> : vector<2x96xf32>
    %70 = tpu.matmul %68, %6, %cst_18 {dimension_numbers = #tpu.dot_dimension_numbers<[1], [0], [0], [1], [0, 0, 1, 1], [], []>} : vector<2x32xf32>, vector<32x96xf32>, vector<2x96xf32> -> vector<2x96xf32>
    %71 = vector.broadcast %7 : vector<1x96xf32> to vector<2x96xf32>
    %72 = arith.addf %70, %71 : vector<2x96xf32>
    %73 = vector.extract_strided_slice %69 {offsets = [0, 0], sizes = [2, 32], strides = [1, 1]} : vector<2x96xf32> to vector<2x32xf32>
    %74 = vector.extract_strided_slice %72 {offsets = [0, 0], sizes = [2, 32], strides = [1, 1]} : vector<2x96xf32> to vector<2x32xf32>
    %75 = arith.addf %73, %74 : vector<2x32xf32>
    %76 = arith.negf %75 : vector<2x32xf32>
    %77 = math.exp %76 : vector<2x32xf32>
    %cst_19 = arith.constant 1.000000e+00 : f32
    %78 = vector.broadcast %cst_19 : f32 to vector<2x32xf32>
    %79 = arith.addf %78, %77 : vector<2x32xf32>
    %80 = arith.divf %78, %79 : vector<2x32xf32>
    %81 = vector.extract_strided_slice %69 {offsets = [0, 32], sizes = [2, 32], strides = [1, 1]} : vector<2x96xf32> to vector<2x32xf32>
    %82 = vector.extract_strided_slice %72 {offsets = [0, 32], sizes = [2, 32], strides = [1, 1]} : vector<2x96xf32> to vector<2x32xf32>
    %83 = arith.addf %81, %82 : vector<2x32xf32>
    %84 = arith.negf %83 : vector<2x32xf32>
    %85 = math.exp %84 : vector<2x32xf32>
    %cst_20 = arith.constant 1.000000e+00 : f32
    %86 = vector.broadcast %cst_20 : f32 to vector<2x32xf32>
    %87 = arith.addf %86, %85 : vector<2x32xf32>
    %88 = arith.divf %86, %87 : vector<2x32xf32>
    %89 = vector.extract_strided_slice %69 {offsets = [0, 64], sizes = [2, 32], strides = [1, 1]} : vector<2x96xf32> to vector<2x32xf32>
    %90 = vector.extract_strided_slice %72 {offsets = [0, 64], sizes = [2, 32], strides = [1, 1]} : vector<2x96xf32> to vector<2x32xf32>
    %91 = arith.mulf %80, %90 : vector<2x32xf32>
    %92 = arith.addf %89, %91 : vector<2x32xf32>
    %93 = math.tanh %92 : vector<2x32xf32>
    %cst_21 = arith.constant 1.000000e+00 : f32
    %94 = vector.broadcast %cst_21 : f32 to vector<2x32xf32>
    %95 = arith.subf %94, %88 : vector<2x32xf32>
    %96 = arith.mulf %95, %93 : vector<2x32xf32>
    %97 = arith.mulf %88, %68 : vector<2x32xf32>
    %98 = arith.addf %96, %97 : vector<2x32xf32>
    %99 = vector.extract_strided_slice %5 {offsets = [6, 0], sizes = [2, 96], strides = [1, 1]} : vector<16x96xf32> to vector<2x96xf32>
    %cst_22 = arith.constant dense<0.000000e+00> : vector<2x96xf32>
    %100 = tpu.matmul %98, %6, %cst_22 {dimension_numbers = #tpu.dot_dimension_numbers<[1], [0], [0], [1], [0, 0, 1, 1], [], []>} : vector<2x32xf32>, vector<32x96xf32>, vector<2x96xf32> -> vector<2x96xf32>
    %101 = vector.broadcast %7 : vector<1x96xf32> to vector<2x96xf32>
    %102 = arith.addf %100, %101 : vector<2x96xf32>
    %103 = vector.extract_strided_slice %99 {offsets = [0, 0], sizes = [2, 32], strides = [1, 1]} : vector<2x96xf32> to vector<2x32xf32>
    %104 = vector.extract_strided_slice %102 {offsets = [0, 0], sizes = [2, 32], strides = [1, 1]} : vector<2x96xf32> to vector<2x32xf32>
    %105 = arith.addf %103, %104 : vector<2x32xf32>
    %106 = arith.negf %105 : vector<2x32xf32>
    %107 = math.exp %106 : vector<2x32xf32>
    %cst_23 = arith.constant 1.000000e+00 : f32
    %108 = vector.broadcast %cst_23 : f32 to vector<2x32xf32>
    %109 = arith.addf %108, %107 : vector<2x32xf32>
    %110 = arith.divf %108, %109 : vector<2x32xf32>
    %111 = vector.extract_strided_slice %99 {offsets = [0, 32], sizes = [2, 32], strides = [1, 1]} : vector<2x96xf32> to vector<2x32xf32>
    %112 = vector.extract_strided_slice %102 {offsets = [0, 32], sizes = [2, 32], strides = [1, 1]} : vector<2x96xf32> to vector<2x32xf32>
    %113 = arith.addf %111, %112 : vector<2x32xf32>
    %114 = arith.negf %113 : vector<2x32xf32>
    %115 = math.exp %114 : vector<2x32xf32>
    %cst_24 = arith.constant 1.000000e+00 : f32
    %116 = vector.broadcast %cst_24 : f32 to vector<2x32xf32>
    %117 = arith.addf %116, %115 : vector<2x32xf32>
    %118 = arith.divf %116, %117 : vector<2x32xf32>
    %119 = vector.extract_strided_slice %99 {offsets = [0, 64], sizes = [2, 32], strides = [1, 1]} : vector<2x96xf32> to vector<2x32xf32>
    %120 = vector.extract_strided_slice %102 {offsets = [0, 64], sizes = [2, 32], strides = [1, 1]} : vector<2x96xf32> to vector<2x32xf32>
    %121 = arith.mulf %110, %120 : vector<2x32xf32>
    %122 = arith.addf %119, %121 : vector<2x32xf32>
    %123 = math.tanh %122 : vector<2x32xf32>
    %cst_25 = arith.constant 1.000000e+00 : f32
    %124 = vector.broadcast %cst_25 : f32 to vector<2x32xf32>
    %125 = arith.subf %124, %118 : vector<2x32xf32>
    %126 = arith.mulf %125, %123 : vector<2x32xf32>
    %127 = arith.mulf %118, %98 : vector<2x32xf32>
    %128 = arith.addf %126, %127 : vector<2x32xf32>
    %129 = vector.extract_strided_slice %5 {offsets = [8, 0], sizes = [2, 96], strides = [1, 1]} : vector<16x96xf32> to vector<2x96xf32>
    %cst_26 = arith.constant dense<0.000000e+00> : vector<2x96xf32>
    %130 = tpu.matmul %128, %6, %cst_26 {dimension_numbers = #tpu.dot_dimension_numbers<[1], [0], [0], [1], [0, 0, 1, 1], [], []>} : vector<2x32xf32>, vector<32x96xf32>, vector<2x96xf32> -> vector<2x96xf32>
    %131 = vector.broadcast %7 : vector<1x96xf32> to vector<2x96xf32>
    %132 = arith.addf %130, %131 : vector<2x96xf32>
    %133 = vector.extract_strided_slice %129 {offsets = [0, 0], sizes = [2, 32], strides = [1, 1]} : vector<2x96xf32> to vector<2x32xf32>
    %134 = vector.extract_strided_slice %132 {offsets = [0, 0], sizes = [2, 32], strides = [1, 1]} : vector<2x96xf32> to vector<2x32xf32>
    %135 = arith.addf %133, %134 : vector<2x32xf32>
    %136 = arith.negf %135 : vector<2x32xf32>
    %137 = math.exp %136 : vector<2x32xf32>
    %cst_27 = arith.constant 1.000000e+00 : f32
    %138 = vector.broadcast %cst_27 : f32 to vector<2x32xf32>
    %139 = arith.addf %138, %137 : vector<2x32xf32>
    %140 = arith.divf %138, %139 : vector<2x32xf32>
    %141 = vector.extract_strided_slice %129 {offsets = [0, 32], sizes = [2, 32], strides = [1, 1]} : vector<2x96xf32> to vector<2x32xf32>
    %142 = vector.extract_strided_slice %132 {offsets = [0, 32], sizes = [2, 32], strides = [1, 1]} : vector<2x96xf32> to vector<2x32xf32>
    %143 = arith.addf %141, %142 : vector<2x32xf32>
    %144 = arith.negf %143 : vector<2x32xf32>
    %145 = math.exp %144 : vector<2x32xf32>
    %cst_28 = arith.constant 1.000000e+00 : f32
    %146 = vector.broadcast %cst_28 : f32 to vector<2x32xf32>
    %147 = arith.addf %146, %145 : vector<2x32xf32>
    %148 = arith.divf %146, %147 : vector<2x32xf32>
    %149 = vector.extract_strided_slice %129 {offsets = [0, 64], sizes = [2, 32], strides = [1, 1]} : vector<2x96xf32> to vector<2x32xf32>
    %150 = vector.extract_strided_slice %132 {offsets = [0, 64], sizes = [2, 32], strides = [1, 1]} : vector<2x96xf32> to vector<2x32xf32>
    %151 = arith.mulf %140, %150 : vector<2x32xf32>
    %152 = arith.addf %149, %151 : vector<2x32xf32>
    %153 = math.tanh %152 : vector<2x32xf32>
    %cst_29 = arith.constant 1.000000e+00 : f32
    %154 = vector.broadcast %cst_29 : f32 to vector<2x32xf32>
    %155 = arith.subf %154, %148 : vector<2x32xf32>
    %156 = arith.mulf %155, %153 : vector<2x32xf32>
    %157 = arith.mulf %148, %128 : vector<2x32xf32>
    %158 = arith.addf %156, %157 : vector<2x32xf32>
    %159 = vector.extract_strided_slice %5 {offsets = [10, 0], sizes = [2, 96], strides = [1, 1]} : vector<16x96xf32> to vector<2x96xf32>
    %cst_30 = arith.constant dense<0.000000e+00> : vector<2x96xf32>
    %160 = tpu.matmul %158, %6, %cst_30 {dimension_numbers = #tpu.dot_dimension_numbers<[1], [0], [0], [1], [0, 0, 1, 1], [], []>} : vector<2x32xf32>, vector<32x96xf32>, vector<2x96xf32> -> vector<2x96xf32>
    %161 = vector.broadcast %7 : vector<1x96xf32> to vector<2x96xf32>
    %162 = arith.addf %160, %161 : vector<2x96xf32>
    %163 = vector.extract_strided_slice %159 {offsets = [0, 0], sizes = [2, 32], strides = [1, 1]} : vector<2x96xf32> to vector<2x32xf32>
    %164 = vector.extract_strided_slice %162 {offsets = [0, 0], sizes = [2, 32], strides = [1, 1]} : vector<2x96xf32> to vector<2x32xf32>
    %165 = arith.addf %163, %164 : vector<2x32xf32>
    %166 = arith.negf %165 : vector<2x32xf32>
    %167 = math.exp %166 : vector<2x32xf32>
    %cst_31 = arith.constant 1.000000e+00 : f32
    %168 = vector.broadcast %cst_31 : f32 to vector<2x32xf32>
    %169 = arith.addf %168, %167 : vector<2x32xf32>
    %170 = arith.divf %168, %169 : vector<2x32xf32>
    %171 = vector.extract_strided_slice %159 {offsets = [0, 32], sizes = [2, 32], strides = [1, 1]} : vector<2x96xf32> to vector<2x32xf32>
    %172 = vector.extract_strided_slice %162 {offsets = [0, 32], sizes = [2, 32], strides = [1, 1]} : vector<2x96xf32> to vector<2x32xf32>
    %173 = arith.addf %171, %172 : vector<2x32xf32>
    %174 = arith.negf %173 : vector<2x32xf32>
    %175 = math.exp %174 : vector<2x32xf32>
    %cst_32 = arith.constant 1.000000e+00 : f32
    %176 = vector.broadcast %cst_32 : f32 to vector<2x32xf32>
    %177 = arith.addf %176, %175 : vector<2x32xf32>
    %178 = arith.divf %176, %177 : vector<2x32xf32>
    %179 = vector.extract_strided_slice %159 {offsets = [0, 64], sizes = [2, 32], strides = [1, 1]} : vector<2x96xf32> to vector<2x32xf32>
    %180 = vector.extract_strided_slice %162 {offsets = [0, 64], sizes = [2, 32], strides = [1, 1]} : vector<2x96xf32> to vector<2x32xf32>
    %181 = arith.mulf %170, %180 : vector<2x32xf32>
    %182 = arith.addf %179, %181 : vector<2x32xf32>
    %183 = math.tanh %182 : vector<2x32xf32>
    %cst_33 = arith.constant 1.000000e+00 : f32
    %184 = vector.broadcast %cst_33 : f32 to vector<2x32xf32>
    %185 = arith.subf %184, %178 : vector<2x32xf32>
    %186 = arith.mulf %185, %183 : vector<2x32xf32>
    %187 = arith.mulf %178, %158 : vector<2x32xf32>
    %188 = arith.addf %186, %187 : vector<2x32xf32>
    %189 = vector.extract_strided_slice %5 {offsets = [12, 0], sizes = [2, 96], strides = [1, 1]} : vector<16x96xf32> to vector<2x96xf32>
    %cst_34 = arith.constant dense<0.000000e+00> : vector<2x96xf32>
    %190 = tpu.matmul %188, %6, %cst_34 {dimension_numbers = #tpu.dot_dimension_numbers<[1], [0], [0], [1], [0, 0, 1, 1], [], []>} : vector<2x32xf32>, vector<32x96xf32>, vector<2x96xf32> -> vector<2x96xf32>
    %191 = vector.broadcast %7 : vector<1x96xf32> to vector<2x96xf32>
    %192 = arith.addf %190, %191 : vector<2x96xf32>
    %193 = vector.extract_strided_slice %189 {offsets = [0, 0], sizes = [2, 32], strides = [1, 1]} : vector<2x96xf32> to vector<2x32xf32>
    %194 = vector.extract_strided_slice %192 {offsets = [0, 0], sizes = [2, 32], strides = [1, 1]} : vector<2x96xf32> to vector<2x32xf32>
    %195 = arith.addf %193, %194 : vector<2x32xf32>
    %196 = arith.negf %195 : vector<2x32xf32>
    %197 = math.exp %196 : vector<2x32xf32>
    %cst_35 = arith.constant 1.000000e+00 : f32
    %198 = vector.broadcast %cst_35 : f32 to vector<2x32xf32>
    %199 = arith.addf %198, %197 : vector<2x32xf32>
    %200 = arith.divf %198, %199 : vector<2x32xf32>
    %201 = vector.extract_strided_slice %189 {offsets = [0, 32], sizes = [2, 32], strides = [1, 1]} : vector<2x96xf32> to vector<2x32xf32>
    %202 = vector.extract_strided_slice %192 {offsets = [0, 32], sizes = [2, 32], strides = [1, 1]} : vector<2x96xf32> to vector<2x32xf32>
    %203 = arith.addf %201, %202 : vector<2x32xf32>
    %204 = arith.negf %203 : vector<2x32xf32>
    %205 = math.exp %204 : vector<2x32xf32>
    %cst_36 = arith.constant 1.000000e+00 : f32
    %206 = vector.broadcast %cst_36 : f32 to vector<2x32xf32>
    %207 = arith.addf %206, %205 : vector<2x32xf32>
    %208 = arith.divf %206, %207 : vector<2x32xf32>
    %209 = vector.extract_strided_slice %189 {offsets = [0, 64], sizes = [2, 32], strides = [1, 1]} : vector<2x96xf32> to vector<2x32xf32>
    %210 = vector.extract_strided_slice %192 {offsets = [0, 64], sizes = [2, 32], strides = [1, 1]} : vector<2x96xf32> to vector<2x32xf32>
    %211 = arith.mulf %200, %210 : vector<2x32xf32>
    %212 = arith.addf %209, %211 : vector<2x32xf32>
    %213 = math.tanh %212 : vector<2x32xf32>
    %cst_37 = arith.constant 1.000000e+00 : f32
    %214 = vector.broadcast %cst_37 : f32 to vector<2x32xf32>
    %215 = arith.subf %214, %208 : vector<2x32xf32>
    %216 = arith.mulf %215, %213 : vector<2x32xf32>
    %217 = arith.mulf %208, %188 : vector<2x32xf32>
    %218 = arith.addf %216, %217 : vector<2x32xf32>
    %219 = vector.extract_strided_slice %5 {offsets = [14, 0], sizes = [2, 96], strides = [1, 1]} : vector<16x96xf32> to vector<2x96xf32>
    %cst_38 = arith.constant dense<0.000000e+00> : vector<2x96xf32>
    %220 = tpu.matmul %218, %6, %cst_38 {dimension_numbers = #tpu.dot_dimension_numbers<[1], [0], [0], [1], [0, 0, 1, 1], [], []>} : vector<2x32xf32>, vector<32x96xf32>, vector<2x96xf32> -> vector<2x96xf32>
    %221 = vector.broadcast %7 : vector<1x96xf32> to vector<2x96xf32>
    %222 = arith.addf %220, %221 : vector<2x96xf32>
    %223 = vector.extract_strided_slice %219 {offsets = [0, 0], sizes = [2, 32], strides = [1, 1]} : vector<2x96xf32> to vector<2x32xf32>
    %224 = vector.extract_strided_slice %222 {offsets = [0, 0], sizes = [2, 32], strides = [1, 1]} : vector<2x96xf32> to vector<2x32xf32>
    %225 = arith.addf %223, %224 : vector<2x32xf32>
    %226 = arith.negf %225 : vector<2x32xf32>
    %227 = math.exp %226 : vector<2x32xf32>
    %cst_39 = arith.constant 1.000000e+00 : f32
    %228 = vector.broadcast %cst_39 : f32 to vector<2x32xf32>
    %229 = arith.addf %228, %227 : vector<2x32xf32>
    %230 = arith.divf %228, %229 : vector<2x32xf32>
    %231 = vector.extract_strided_slice %219 {offsets = [0, 32], sizes = [2, 32], strides = [1, 1]} : vector<2x96xf32> to vector<2x32xf32>
    %232 = vector.extract_strided_slice %222 {offsets = [0, 32], sizes = [2, 32], strides = [1, 1]} : vector<2x96xf32> to vector<2x32xf32>
    %233 = arith.addf %231, %232 : vector<2x32xf32>
    %234 = arith.negf %233 : vector<2x32xf32>
    %235 = math.exp %234 : vector<2x32xf32>
    %cst_40 = arith.constant 1.000000e+00 : f32
    %236 = vector.broadcast %cst_40 : f32 to vector<2x32xf32>
    %237 = arith.addf %236, %235 : vector<2x32xf32>
    %238 = arith.divf %236, %237 : vector<2x32xf32>
    %239 = vector.extract_strided_slice %219 {offsets = [0, 64], sizes = [2, 32], strides = [1, 1]} : vector<2x96xf32> to vector<2x32xf32>
    %240 = vector.extract_strided_slice %222 {offsets = [0, 64], sizes = [2, 32], strides = [1, 1]} : vector<2x96xf32> to vector<2x32xf32>
    %241 = arith.mulf %230, %240 : vector<2x32xf32>
    %242 = arith.addf %239, %241 : vector<2x32xf32>
    %243 = math.tanh %242 : vector<2x32xf32>
    %cst_41 = arith.constant 1.000000e+00 : f32
    %244 = vector.broadcast %cst_41 : f32 to vector<2x32xf32>
    %245 = arith.subf %244, %238 : vector<2x32xf32>
    %246 = arith.mulf %245, %243 : vector<2x32xf32>
    %247 = arith.mulf %238, %218 : vector<2x32xf32>
    %248 = arith.addf %246, %247 : vector<2x32xf32>
    %249 = tpu.concatenate %38, %68, %98, %128, %158, %188, %218, %248 in 0 : vector<2x32xf32>, vector<2x32xf32>, vector<2x32xf32>, vector<2x32xf32>, vector<2x32xf32>, vector<2x32xf32>, vector<2x32xf32>, vector<2x32xf32> -> vector<16x32xf32>
    %c0_42 = arith.constant 0 : index
    %c0_43 = arith.constant 0 : index
    %250 = vector.load %arg9[%c0_42, %c0_43] : memref<32x32xf32, #tpu.memory_space<vmem>>, vector<32x32xf32>
    %cst_44 = arith.constant dense<0.000000e+00> : vector<32x16xf32>
    %251 = tpu.matmul %250, %249, %cst_44 {dimension_numbers = #tpu.dot_dimension_numbers<[1], [1], [0], [0], [0, 0, 1, 0], [], []>} : vector<32x32xf32>, vector<16x32xf32>, vector<32x16xf32> -> vector<32x16xf32>
    %c0_45 = arith.constant 0 : index
    %c0_46 = arith.constant 0 : index
    %252 = vector.load %arg8[%c0_45, %c0_46] : memref<32x32xf32, #tpu.memory_space<vmem>>, vector<32x32xf32>
    %c0_47 = arith.constant 0 : index
    %c0_48 = arith.constant 0 : index
    %c0_49 = arith.constant 0 : index
    %253 = vector.load %arg2[%c0_47, %c0_48, %c0_49] : memref<2x32x16xf32, #tpu.memory_space<vmem>>, vector<1x32x16xf32>
    %254 = vector.shape_cast %253 : vector<1x32x16xf32> to vector<32x16xf32>
    %cst_50 = arith.constant dense<0.000000e+00> : vector<32x16xf32>
    %255 = tpu.matmul %252, %254, %cst_50 {dimension_numbers = #tpu.dot_dimension_numbers<[1], [0], [0], [1], [0, 0, 1, 1], [], []>} : vector<32x32xf32>, vector<32x16xf32>, vector<32x16xf32> -> vector<32x16xf32>
    %256 = tpu.concatenate %255, %255, %255, %255, %255, %255, %255, %255 in 1 : vector<32x16xf32>, vector<32x16xf32>, vector<32x16xf32>, vector<32x16xf32>, vector<32x16xf32>, vector<32x16xf32>, vector<32x16xf32>, vector<32x16xf32> -> vector<32x128xf32>
    %257 = vector.extract_strided_slice %251 {offsets = [0, 0], sizes = [32, 1], strides = [1, 1]} : vector<32x16xf32> to vector<32x1xf32>
    %258 = vector.shape_cast %257 : vector<32x1xf32> to vector<32x1xf32>
    %259 = vector.broadcast %258 : vector<32x1xf32> to vector<32x16xf32>
    %260 = vector.extract_strided_slice %251 {offsets = [0, 2], sizes = [32, 1], strides = [1, 1]} : vector<32x16xf32> to vector<32x1xf32>
    %261 = vector.shape_cast %260 : vector<32x1xf32> to vector<32x1xf32>
    %262 = vector.broadcast %261 : vector<32x1xf32> to vector<32x16xf32>
    %263 = vector.extract_strided_slice %251 {offsets = [0, 4], sizes = [32, 1], strides = [1, 1]} : vector<32x16xf32> to vector<32x1xf32>
    %264 = vector.shape_cast %263 : vector<32x1xf32> to vector<32x1xf32>
    %265 = vector.broadcast %264 : vector<32x1xf32> to vector<32x16xf32>
    %266 = vector.extract_strided_slice %251 {offsets = [0, 6], sizes = [32, 1], strides = [1, 1]} : vector<32x16xf32> to vector<32x1xf32>
    %267 = vector.shape_cast %266 : vector<32x1xf32> to vector<32x1xf32>
    %268 = vector.broadcast %267 : vector<32x1xf32> to vector<32x16xf32>
    %269 = vector.extract_strided_slice %251 {offsets = [0, 8], sizes = [32, 1], strides = [1, 1]} : vector<32x16xf32> to vector<32x1xf32>
    %270 = vector.shape_cast %269 : vector<32x1xf32> to vector<32x1xf32>
    %271 = vector.broadcast %270 : vector<32x1xf32> to vector<32x16xf32>
    %272 = vector.extract_strided_slice %251 {offsets = [0, 10], sizes = [32, 1], strides = [1, 1]} : vector<32x16xf32> to vector<32x1xf32>
    %273 = vector.shape_cast %272 : vector<32x1xf32> to vector<32x1xf32>
    %274 = vector.broadcast %273 : vector<32x1xf32> to vector<32x16xf32>
    %275 = vector.extract_strided_slice %251 {offsets = [0, 12], sizes = [32, 1], strides = [1, 1]} : vector<32x16xf32> to vector<32x1xf32>
    %276 = vector.shape_cast %275 : vector<32x1xf32> to vector<32x1xf32>
    %277 = vector.broadcast %276 : vector<32x1xf32> to vector<32x16xf32>
    %278 = vector.extract_strided_slice %251 {offsets = [0, 14], sizes = [32, 1], strides = [1, 1]} : vector<32x16xf32> to vector<32x1xf32>
    %279 = vector.shape_cast %278 : vector<32x1xf32> to vector<32x1xf32>
    %280 = vector.broadcast %279 : vector<32x1xf32> to vector<32x16xf32>
    %281 = tpu.concatenate %259, %262, %265, %268, %271, %274, %277, %280 in 1 : vector<32x16xf32>, vector<32x16xf32>, vector<32x16xf32>, vector<32x16xf32>, vector<32x16xf32>, vector<32x16xf32>, vector<32x16xf32>, vector<32x16xf32> -> vector<32x128xf32>
    %282 = arith.addf %256, %281 : vector<32x128xf32>
    %283 = math.tanh %282 : vector<32x128xf32>
    %c0_51 = arith.constant 0 : index
    %c0_52 = arith.constant 0 : index
    %284 = vector.load %arg10[%c0_51, %c0_52] : memref<1x32xf32, #tpu.memory_space<vmem>>, vector<1x32xf32>
    %cst_53 = arith.constant dense<0.000000e+00> : vector<1x128xf32>
    %285 = tpu.matmul %284, %283, %cst_53 {dimension_numbers = #tpu.dot_dimension_numbers<[1], [0], [0], [1], [0, 0, 1, 1], [], []>} : vector<1x32xf32>, vector<32x128xf32>, vector<1x128xf32> -> vector<1x128xf32>
    %c0_54 = arith.constant 0 : index
    %c0_55 = arith.constant 0 : index
    %286 = vector.load %arg8[%c0_54, %c0_55] : memref<32x32xf32, #tpu.memory_space<vmem>>, vector<32x32xf32>
    %c1 = arith.constant 1 : index
    %c0_56 = arith.constant 0 : index
    %c0_57 = arith.constant 0 : index
    %287 = vector.load %arg2[%c1, %c0_56, %c0_57] : memref<2x32x16xf32, #tpu.memory_space<vmem>>, vector<1x32x16xf32>
    %288 = vector.shape_cast %287 : vector<1x32x16xf32> to vector<32x16xf32>
    %cst_58 = arith.constant dense<0.000000e+00> : vector<32x16xf32>
    %289 = tpu.matmul %286, %288, %cst_58 {dimension_numbers = #tpu.dot_dimension_numbers<[1], [0], [0], [1], [0, 0, 1, 1], [], []>} : vector<32x32xf32>, vector<32x16xf32>, vector<32x16xf32> -> vector<32x16xf32>
    %290 = tpu.concatenate %289, %289, %289, %289, %289, %289, %289, %289 in 1 : vector<32x16xf32>, vector<32x16xf32>, vector<32x16xf32>, vector<32x16xf32>, vector<32x16xf32>, vector<32x16xf32>, vector<32x16xf32>, vector<32x16xf32> -> vector<32x128xf32>
    %291 = vector.extract_strided_slice %251 {offsets = [0, 1], sizes = [32, 1], strides = [1, 1]} : vector<32x16xf32> to vector<32x1xf32>
    %292 = vector.shape_cast %291 : vector<32x1xf32> to vector<32x1xf32>
    %293 = vector.broadcast %292 : vector<32x1xf32> to vector<32x16xf32>
    %294 = vector.extract_strided_slice %251 {offsets = [0, 3], sizes = [32, 1], strides = [1, 1]} : vector<32x16xf32> to vector<32x1xf32>
    %295 = vector.shape_cast %294 : vector<32x1xf32> to vector<32x1xf32>
    %296 = vector.broadcast %295 : vector<32x1xf32> to vector<32x16xf32>
    %297 = vector.extract_strided_slice %251 {offsets = [0, 5], sizes = [32, 1], strides = [1, 1]} : vector<32x16xf32> to vector<32x1xf32>
    %298 = vector.shape_cast %297 : vector<32x1xf32> to vector<32x1xf32>
    %299 = vector.broadcast %298 : vector<32x1xf32> to vector<32x16xf32>
    %300 = vector.extract_strided_slice %251 {offsets = [0, 7], sizes = [32, 1], strides = [1, 1]} : vector<32x16xf32> to vector<32x1xf32>
    %301 = vector.shape_cast %300 : vector<32x1xf32> to vector<32x1xf32>
    %302 = vector.broadcast %301 : vector<32x1xf32> to vector<32x16xf32>
    %303 = vector.extract_strided_slice %251 {offsets = [0, 9], sizes = [32, 1], strides = [1, 1]} : vector<32x16xf32> to vector<32x1xf32>
    %304 = vector.shape_cast %303 : vector<32x1xf32> to vector<32x1xf32>
    %305 = vector.broadcast %304 : vector<32x1xf32> to vector<32x16xf32>
    %306 = vector.extract_strided_slice %251 {offsets = [0, 11], sizes = [32, 1], strides = [1, 1]} : vector<32x16xf32> to vector<32x1xf32>
    %307 = vector.shape_cast %306 : vector<32x1xf32> to vector<32x1xf32>
    %308 = vector.broadcast %307 : vector<32x1xf32> to vector<32x16xf32>
    %309 = vector.extract_strided_slice %251 {offsets = [0, 13], sizes = [32, 1], strides = [1, 1]} : vector<32x16xf32> to vector<32x1xf32>
    %310 = vector.shape_cast %309 : vector<32x1xf32> to vector<32x1xf32>
    %311 = vector.broadcast %310 : vector<32x1xf32> to vector<32x16xf32>
    %312 = vector.extract_strided_slice %251 {offsets = [0, 15], sizes = [32, 1], strides = [1, 1]} : vector<32x16xf32> to vector<32x1xf32>
    %313 = vector.shape_cast %312 : vector<32x1xf32> to vector<32x1xf32>
    %314 = vector.broadcast %313 : vector<32x1xf32> to vector<32x16xf32>
    %315 = tpu.concatenate %293, %296, %299, %302, %305, %308, %311, %314 in 1 : vector<32x16xf32>, vector<32x16xf32>, vector<32x16xf32>, vector<32x16xf32>, vector<32x16xf32>, vector<32x16xf32>, vector<32x16xf32>, vector<32x16xf32> -> vector<32x128xf32>
    %316 = arith.addf %290, %315 : vector<32x128xf32>
    %317 = math.tanh %316 : vector<32x128xf32>
    %c0_59 = arith.constant 0 : index
    %c0_60 = arith.constant 0 : index
    %318 = vector.load %arg10[%c0_59, %c0_60] : memref<1x32xf32, #tpu.memory_space<vmem>>, vector<1x32xf32>
    %cst_61 = arith.constant dense<0.000000e+00> : vector<1x128xf32>
    %319 = tpu.matmul %318, %317, %cst_61 {dimension_numbers = #tpu.dot_dimension_numbers<[1], [0], [0], [1], [0, 0, 1, 1], [], []>} : vector<1x32xf32>, vector<32x128xf32>, vector<1x128xf32> -> vector<1x128xf32>
    %320 = tpu.concatenate %285, %319 in 0 : vector<1x128xf32>, vector<1x128xf32> -> vector<2x128xf32>
    %c0_62 = arith.constant 0 : index
    %c0_63 = arith.constant 0 : index
    %321 = vector.load %arg3[%c0_62, %c0_63] : memref<2x128xf32, #tpu.memory_space<vmem>>, vector<2x128xf32>
    %322 = arith.addf %320, %321 : vector<2x128xf32>
    %c0_64 = arith.constant 0 : index
    %c0_65 = arith.constant 0 : index
    %323 = vector.load %arg11[%c0_64, %c0_65] : memref<2x128xf32, #tpu.memory_space<vmem>>, vector<2x128xf32>
    tpu.vector_store %arg11[%c0_64, %c0_65], %322 {strides = array<i32>} : memref<2x128xf32, #tpu.memory_space<vmem>>, vector<2x128xf32>,
    return
  }
  func.func @transform_0(%arg0: i32) -> (i32, i32) {
    %c0_i32 = arith.constant 0 : i32
    %c0_i32_0 = arith.constant 0 : i32
    %c0_i32_1 = arith.constant 0 : i32
    return %c0_i32, %c0_i32_0 : i32, i32
  }
  func.func @transform_1(%arg0: i32) -> (i32, i32, i32) {
    %c0_i32 = arith.constant 0 : i32
    %c0_i32_0 = arith.constant 0 : i32
    %c0_i32_1 = arith.constant 0 : i32
    %c0_i32_2 = arith.constant 0 : i32
    return %c0_i32, %c0_i32_0, %c0_i32_1 : i32, i32, i32
  }
  func.func @transform_2(%arg0: i32) -> (i32, i32) {
    %c0_i32 = arith.constant 0 : i32
    %c0_i32_0 = arith.constant 0 : i32
    %c0_i32_1 = arith.constant 0 : i32
    return %c0_i32, %c0_i32_0 : i32, i32
  }
  func.func @transform_3(%arg0: i32) -> (i32, i32) {
    %c0_i32 = arith.constant 0 : i32
    %c0_i32_0 = arith.constant 0 : i32
    %c0_i32_1 = arith.constant 0 : i32
    return %c0_i32, %c0_i32_0 : i32, i32
  }
  func.func @transform_4(%arg0: i32) -> (i32, i32) {
    %c0_i32 = arith.constant 0 : i32
    %c0_i32_0 = arith.constant 0 : i32
    %c0_i32_1 = arith.constant 0 : i32
    return %c0_i32, %c0_i32_0 : i32, i32
  }
  func.func @transform_5(%arg0: i32) -> (i32, i32) {
    %c0_i32 = arith.constant 0 : i32
    %c0_i32_0 = arith.constant 0 : i32
    %c0_i32_1 = arith.constant 0 : i32
    return %c0_i32, %c0_i32_0 : i32, i32
  }
  func.func @transform_6(%arg0: i32) -> (i32, i32) {
    %c0_i32 = arith.constant 0 : i32
    %c0_i32_0 = arith.constant 0 : i32
    %c0_i32_1 = arith.constant 0 : i32
    return %c0_i32, %c0_i32_0 : i32, i32
  }
  func.func @transform_7(%arg0: i32) -> (i32, i32) {
    %c0_i32 = arith.constant 0 : i32
    %c0_i32_0 = arith.constant 0 : i32
    %c0_i32_1 = arith.constant 0 : i32
    return %c0_i32, %c0_i32_0 : i32, i32
  }
  func.func @transform_8(%arg0: i32) -> (i32, i32) {
    %c0_i32 = arith.constant 0 : i32
    %c0_i32_0 = arith.constant 0 : i32
    %c0_i32_1 = arith.constant 0 : i32
    return %c0_i32, %c0_i32_0 : i32, i32
  }
  func.func @transform_9(%arg0: i32) -> (i32, i32) {
    %c0_i32 = arith.constant 0 : i32
    %c0_i32_0 = arith.constant 0 : i32
    %c0_i32_1 = arith.constant 0 : i32
    return %c0_i32, %c0_i32_0 : i32, i32
  }
  func.func @transform_10(%arg0: i32) -> (i32, i32) {
    %c0_i32 = arith.constant 0 : i32
    %c0_i32_0 = arith.constant 0 : i32
    %c0_i32_1 = arith.constant 0 : i32
    return %c0_i32, %c0_i32_0 : i32, i32
  }
}

</mosaic_0001>

<bundles_post_ra>
// kernel: tpu_custom_call.1
= control target key start
LH: loop header
LB: loop body
LE: loop exit
PB: predicated region body
PF: predicated region fallthrough
CT: control target
= control target key end

     0   :  { %15 = vsyncpa [#allocation3], 0  ;;  %s3423_s0 = inlined_call_operand.hbm [shape: f32[16,32], index: 0, kind: input, shape index: {}]   ;;  %s3424_s1 = inlined_call_operand.vmem [shape: f32[2,32,16], index: 1, kind: input, shape index: {}]   ;;  %s3425_s2 = inlined_call_operand.vmem [shape: f32[2,128], index: 2, kind: input, shape index: {}]   ;;  %s3426_s3 = inlined_call_operand.vmem [shape: f32[32,96], index: 3, kind: input, shape index: {}]   ;;  %s3427_s4 = inlined_call_operand.vmem [shape: f32[32,96], index: 4, kind: input, shape index: {}]   ;;  %s3428_s5 = inlined_call_operand.vmem [shape: f32[1,96], index: 5, kind: input, shape index: {}]   ;;  %s3429_s6 = inlined_call_operand.vmem [shape: f32[1,96], index: 6, kind: input, shape index: {}]   ;;  %s3430_s7 = inlined_call_operand.vmem [shape: f32[32,32], index: 7, kind: input, shape index: {}]   ;;  %s3431_s8 = inlined_call_operand.hbm [shape: f32[32,32], index: 8, kind: input, shape index: {}]   ;;  %s3432_s9 = inlined_call_operand.vmem [shape: f32[1,32], index: 9, kind: input, shape index: {}]   ;;  %s3433_s10 = inlined_call_operand.hbm [shape: f32[2,128], index: 10, kind: output, shape index: {}]  }
   0x1   :  { %16 = vsyncpa [#allocation6], 0 }
   0x2   :  { %17 = vsyncpa [#allocation4], 0  ;;  %s2560_s13 = smov [#allocation2]  }
   0x3   :  { %s23_s14 = sshll.u32 %s2560_s13, 4  ;;  %s24_s14 = int_to_ptr.vmem [resolvable:$true] %s23_s14 }
   0x4   :  { %s2502_s15 = scalar_lea.vmem %s24_s14, 256  ;;  %p2507_p1 = scmp.lt.s32.totalorder %s24_s14, %s24_s14 }
   0x5   :  { %p2503_p0 = scmp.ne.s32.totalorder %s24_s14, %s2502_s15  ;;  %p2508_p2 = scmp.lt.s32.totalorder %s2502_s15, %s2502_s15 }
   0x7   :  { %p2509_p3 = por %p2508_p2, %p2507_p1 }
   0x9   :  { %p2510_p4 = pnand %p2509_p3, %p2503_p0 }
   0xb   :  { %2513 = shalt.err (!%p2510_p4)
}
   0xc   :  { %s2561_s16 = smov 128   ;;  %s2562_s17 = smov 8  }
   0xd   :  { %29 = dma.hbm_to_vmem [thread:$0]  %s3423_s0, 256, %s24_s14, [#allocation3], %s2561_s16, %s2561_s16, %s2562_s17  }
   0xe   :  { %s2563_s20 = smov [#allocation5]  }
   0xf   :  { %s49_s21 = sshll.u32 %s2563_s20, 4  ;;  %s50_s21 = int_to_ptr.vmem [resolvable:$true] %s49_s21 }
  0x10   :  { %s2522_s22 = scalar_lea.vmem %s50_s21, 512  ;;  %p2527_p6 = scmp.lt.s32.totalorder %s50_s21, %s50_s21 }
  0x11   :  { %p2523_p5 = scmp.ne.s32.totalorder %s50_s21, %s2522_s22  ;;  %p2528_p7 = scmp.lt.s32.totalorder %s2522_s22, %s2522_s22 }
  0x13   :  { %p2529_p8 = por %p2528_p7, %p2527_p6 }
  0x15   :  { %p2530_p9 = pnand %p2529_p8, %p2523_p5 }
  0x17   :  { %2533 = shalt.err (!%p2530_p9)
}
  0x18   :  { %55 = dma.hbm_to_vmem [thread:$0]  %s3431_s8, 512, %s50_s21, [#allocation6], %s2561_s16, %s2561_s16, %s2562_s17  }
  0x19   :  { %2554 = dma.done.wait [#allocation3], 256  }
  0x1a   :  { %2555 = vsyncadd [#allocation3], 4294967040 }
  0x1b   :  { %2556 = dma.done.wait [#allocation6], 512  }
  0x1c   :  { %2557 = vsyncadd [#allocation6], 4294966784  ;;  %v3434_v0 = vmov 0.0   ;;  %vm2565_vm0 = vmmov 0   ;;  %v69_v1 = vld [vmem:[%s3426_s3 + $0x18] sm:$0xff]  ;;  %v68_v3 = vld [vmem:[%s3426_s3 + $0x10] sm:$0xff] }
  0x1d   :  { %2187 = vmatprep.subr.mxu1 %v3434_v0  ;;  %2195 = vmatprep.mubr.msk.f32.mxu1 %vm2565_vm0, %v3434_v0  ;;  %v2660_v2 = vld [vmem:[%s3427_s4 + $0x18] sm:$0xff]  ;;  %v2669_v4 = vld [vmem:[%s3427_s4 + $0x10] sm:$0xff]  ;;  %v67_v5 = vld [vmem:[%s3426_s3 + $0x8] sm:$0xff]  ;;  %vm77_vm1 = vcmask 261120   ;;  %s2566_s21 = smov 64   ;;  %vm1006_vm2 = vcmask 1041408  }
  0x1e   :  { %2176 = vmatprep.subr.mxu0 %v69_v1  ;;  %2188 = vmatpush3.msra.mxu1 %v2660_v2  ;;  %v2678_v6 = vld [vmem:[%s3427_s4 + $0x8] sm:$0xff]  ;;  %v66_v7 = vld [vmem:[%s3426_s3] sm:$0xff]  ;;  %vm1008_vm3 = vcmask 1043456   ;;  %vm1010_vm4 = vcmask 1045504   ;;  %s2569_s20 = smov 32   ;;  %s2571_s22 = smov 80  }
  0x1f   :  { %2177 = vmatpush3.msra.mxu0 %v69_v1  ;;  %2189 = vmatprep.subr.mxu1 %v3434_v0  ;;  %v2688_v8 = vld [vmem:[%s3427_s4] sm:$0xff]  ;;  %v65_v10 = vld [vmem:[#allocation2 + $0x8] sm:$0xff]  ;;  %s2572_s23 = smov 112   ;;  %vm1319_vm5 = vcmask 130048   ;;  %vm1328_vm6 = vcmask 392192   ;;  %vm1333_vm7 = vcmask 523264  }
  0x20   :  { %2178 = vmatprep.subr.mxu0 %v68_v3  ;;  %2190 = vmatpush3.msra.mxu1 %v2669_v4  ;;  %v64_v9 = vld [vmem:[#allocation2] sm:$0xff]  ;;  %vm1338_vm8 = vcmask 654336   ;;  %vm1343_vm9 = vcmask 785408   ;;  %vm1348_vm10 = vcmask 916480   ;;  %vm2038_vm11 = vcmask 1040384   ;;  %s2589_s0 = smov [#allocation7]  }
  0x21   :  { %2179 = vmatpush3.msra.mxu0 %v68_v3  ;;  %2191 = vmatprep.subr.mxu1 %v3434_v0  ;;  %v2721_v11 = vld [vmem:[%s3429_s6] ss:$0 sm:$0xff]  ;;  %s2570_s6 = smov 48   ;;  %s2049_s25 = sshll.u32 %s2589_s0, 4  ;;  %s2050_s25 = int_to_ptr.vmem [resolvable:$true] %s2049_s25 }
  0x22   :  { %2180 = vmatprep.subr.mxu0 %v67_v5  ;;  %2192 = vmatpush3.msra.mxu1 %v2678_v6  ;;  %v2059_v14 = vld [vmem:[%s3428_s5] ss:$0 sm:$0xff]  ;;  %s2567_s5 = smov 96   ;;  %s2534_s26 = scalar_lea.vmem %s2050_s25, 32 }
  0x23   :  { %2181 = vmatpush3.msra.mxu0 %v67_v5  ;;  %2193 = vmatprep.subr.mxu1 %v3434_v0  ;;  %p2535_p10 = scmp.ne.s32.totalorder %s2050_s25, %s2534_s26  ;;  %p2539_p11 = scmp.lt.s32.totalorder %s2050_s25, %s2050_s25 }
  0x24   :  { %2182 = vmatprep.subr.mxu0 %v66_v7  ;;  %2194 = vmatpush3.msra.mxu1 %v2688_v8  ;;  %p2540_p12 = scmp.lt.s32.totalorder %s2534_s26, %s2534_s26 }
  0x25   :  { %2183 = vmatpush3.msra.mxu0 %v66_v7  ;;  %2184 = vmatprep.mubr.msk.f32.mxu0 %vm77_vm1, %v64_v9 }
  0x26   :  { %2196 = vmatmul.mubr.f32.vlgmr.msra.gmra.mxu1 %v3434_v0  ;;  %2185 = vmatmul.mubr.msk.f32.vlgmr.msra.gmra.mxu0 %vm77_vm1, %v65_v10  ;;  %p2541_p13 = por %p2540_p12, %p2539_p11 }
  0x27   :  { %2198 = vmatprep.subr.mxu0 %v3434_v0  ;;  %2206 = vmatprep.mubr.msk.f32.mxu0 %vm2565_vm0, %v3434_v0 }
  0x28   :  { %2199 = vmatpush3.msra.mxu0 %v2660_v2  ;;  %2209 = vmatprep.subr.mxu1 %v3434_v0  ;;  %p2542_p0 = pnand %p2541_p13, %p2535_p10 }
  0x29   :  { %2200 = vmatprep.subr.mxu0 %v3434_v0  ;;  %2210 = vmatpush3.msra.mxu1 %v2660_v2 }
  0x2a   :  { %2201 = vmatpush3.msra.mxu0 %v2669_v4  ;;  %2211 = vmatprep.subr.mxu1 %v3434_v0 }
  0x2b   :  { %2202 = vmatprep.subr.mxu0 %v3434_v0  ;;  %2212 = vmatpush3.msra.mxu1 %v2669_v4 }
  0x2c   :  { %2203 = vmatpush3.msra.mxu0 %v2678_v6  ;;  %2213 = vmatprep.subr.mxu1 %v3434_v0 }
  0x2d   :  { %2204 = vmatprep.subr.mxu0 %v3434_v0  ;;  %2214 = vmatpush3.msra.mxu1 %v2678_v6 }
  0x2e   :  { %2205 = vmatpush3.msra.mxu0 %v2688_v8  ;;  %2215 = vmatprep.subr.mxu1 %v3434_v0 }
  0x2f   :  { %2216 = vmatpush3.msra.mxu1 %v2688_v8  ;;  %2217 = vmatprep.mubr.msk.f32.mxu1 %vm2565_vm0, %v3434_v0 }
  0x30   :  { %2220 = vmatprep.subr.mxu0 %v3434_v0  ;;  %2231 = vmatprep.subr.mxu1 %v3434_v0 }
  0xe6   :  { %v239_v12 = vpop.f32.mrf.mxu1  ;;  %v2186_v13 = vpop.f32.mrf.mxu0 }
  0xe7   :  { %v240_v15 = vadd.f32 %v2721_v11, %v239_v12  ;;  %v2727_v16 = vadd.f32 %v2186_v13, %v2059_v14 }
  0xe8   :  { %v2197_v17 = vpop.f32.mrf.mxu1  ;;  %v150_v18 = vpop.f32.mrf.mxu0 }
  0xe9   :  { %251 = vrot.lane.b32.xlu0 %v240_v15, %s2566_s21  ;;  %v2730_v19 = vadd.f32 %v2059_v14, %v150_v18 }
  0xeb   :  { %v243_v20 = vadd.f32 %v240_v15, %v2730_v19 }
  0xed   :  { %v2063_v21 = vmul.f32 -1.442695, %v243_v20 }
  0xef   :  { %2430 = vpow2.f32 %v2063_v21 }
  0xfc   :  { %v2431_v22 = vpop.eup %2430 }
  0xfd   :  { %v247_v23 = vadd.f32 1.0, %v2431_v22 }
  0xff   :  { %2432 = vrcp.f32 %v247_v23 }
 0x10c   :  { %v2433_v24 = vpop.eup %2432 }
 0x10d   :  { %v261_v30 = vsub.f32 1.0, %v2433_v24  ;;  %v267_v32 = vmul.f32 0.0, %v2433_v24 }
 0x15b   :  { %v252_v25 = vpop.permute.xlu0 %251 }
 0x15c   :  { %v254_v26 = vmul.f32 %v2433_v24, %v252_v25 }
 0x15e   :  { %256 = vrot.lane.b32.xlu0 %v254_v26, %s2566_s21 }
 0x1d0   :  { %v257_v27 = vpop.permute.xlu0 %256 }
 0x1d1   :  { %v259_v28 = vadd.f32 %v257_v27, %v2730_v19 }
 0x1d3   :  { %2434 = vtanh.f32 %v259_v28 }
 0x1e0   :  { %v2435_v29 = vpop.eup %2434 }
 0x1e1   :  { %263 = vrot.lane.b32.xlu1 %v2435_v29, %s2567_s5 }
 0x253   :  { %v264_v31 = vpop.permute.xlu1 %263 }
 0x254   :  { %v266_v33 = vmul.f32 %v264_v31, %v261_v30 }
 0x256   :  { %v2736_v34 = vadd.f32 %v267_v32, %v266_v33 }
 0x258   :  { %270 = vrot.lane.b32.xlu1 %v2736_v34, %s2567_s5  ;;  %v370_v51 = vrot.slane %v2736_v34, 6 }
 0x2ca   :  { %v271_v35 = vpop.permute.xlu1 %270 }
 0x2cb   :  { %2207 = vmatmul.mubr.msk.f32.vlgmr.msra.gmra.mxu0 %vm77_vm1, %v271_v35 }
 0x2cc   :  { %2221 = vmatpush3.msra.mxu0 %v2660_v2  ;;  %2228 = vmatprep.mubr.msk.f32.mxu0 %vm2565_vm0, %v3434_v0 }
 0x2cd   :  { %2222 = vmatprep.subr.mxu0 %v3434_v0 }
 0x2ce   :  { %2223 = vmatpush3.msra.mxu0 %v2669_v4 }
 0x2cf   :  { %2224 = vmatprep.subr.mxu0 %v3434_v0 }
 0x2d0   :  { %2225 = vmatpush3.msra.mxu0 %v2678_v6 }
 0x2d1   :  { %2226 = vmatprep.subr.mxu0 %v3434_v0 }
 0x2d2   :  { %2227 = vmatpush3.msra.mxu0 %v2688_v8 }
 0x2d3   :  { %2242 = vmatprep.subr.mxu0 %v3434_v0 }
 0x38b   :  { %v340_v36 = vpop.f32.mrf.mxu0 }
 0x38c   :  { %v341_v37 = vadd.f32 %v2721_v11, %v340_v36 }
 0x38d   :  { %v2208_v38 = vpop.f32.mrf.mxu0 }
 0x38e   :  { %v345_v39 = vrot.slane %v341_v37, 6 }
 0x390   :  { %354 = vrot.lane.b32.xlu0 %v345_v39, %s2566_s21  ;;  %v347_v40 = vadd.f32 %v345_v39, %v2730_v19 }
 0x392   :  { %v2065_v41 = vmul.f32 -1.442695, %v347_v40 }
 0x394   :  { %2436 = vpow2.f32 %v2065_v41 }
 0x3a1   :  { %v2437_v42 = vpop.eup %2436 }
 0x3a2   :  { %v351_v43 = vadd.f32 1.0, %v2437_v42 }
 0x3a4   :  { %2438 = vrcp.f32 %v351_v43 }
 0x3b1   :  { %v2439_v44 = vpop.eup %2438 }
 0x3b2   :  { %v364_v50 = vsub.f32 1.0, %v2439_v44  ;;  %v372_v54 = vmul.f32 %v2439_v44, %v370_v51 }
 0x402   :  { %v355_v45 = vpop.permute.xlu0 %354 }
 0x403   :  { %v357_v46 = vmul.f32 %v2439_v44, %v355_v45 }
 0x405   :  { %359 = vrot.lane.b32.xlu1 %v357_v46, %s2566_s21 }
 0x477   :  { %v360_v47 = vpop.permute.xlu1 %359 }
 0x478   :  { %v362_v48 = vadd.f32 %v360_v47, %v2730_v19 }
 0x47a   :  { %2440 = vtanh.f32 %v362_v48 }
 0x487   :  { %v2441_v49 = vpop.eup %2440 }
 0x488   :  { %366 = vrot.lane.b32.xlu0 %v2441_v49, %s2567_s5 }
 0x4fa   :  { %v367_v52 = vpop.permute.xlu0 %366 }
 0x4fb   :  { %v369_v53 = vmul.f32 %v367_v52, %v364_v50 }
 0x4fd   :  { %v373_v55 = vadd.f32 %v372_v54, %v369_v53 }
 0x4ff   :  { %v375_v56 = vrot.slane %v373_v55, 2  ;;  %v476_v15 = vrot.slane %v373_v55, 6  ;;  %v1007_v22 = vsel %vm1006_vm2, %v2736_v34, %v373_v55 }
 0x501   :  { %376 = vrot.lane.b32.xlu1 %v375_v56, %s2567_s5 }
 0x573   :  { %v377_v57 = vpop.permute.xlu1 %376 }
 0x574   :  { %2218 = vmatmul.mubr.msk.f32.vlgmr.msra.gmra.mxu1 %vm77_vm1, %v377_v57 }
 0x575   :  { %2232 = vmatpush3.msra.mxu1 %v2660_v2  ;;  %2239 = vmatprep.mubr.msk.f32.mxu1 %vm2565_vm0, %v3434_v0 }
 0x576   :  { %2233 = vmatprep.subr.mxu1 %v3434_v0 }
 0x577   :  { %2234 = vmatpush3.msra.mxu1 %v2669_v4 }
 0x578   :  { %2235 = vmatprep.subr.mxu1 %v3434_v0 }
 0x579   :  { %2236 = vmatpush3.msra.mxu1 %v2678_v6 }
 0x57a   :  { %2237 = vmatprep.subr.mxu1 %v3434_v0 }
 0x57b   :  { %2238 = vmatpush3.msra.mxu1 %v2688_v8 }
 0x57c   :  { %2253 = vmatprep.subr.mxu1 %v3434_v0 }
 0x634   :  { %v446_v58 = vpop.f32.mrf.mxu1 }
 0x635   :  { %v447_v59 = vadd.f32 %v2721_v11, %v446_v58 }
 0x636   :  { %v2219_v60 = vpop.f32.mrf.mxu1 }
 0x637   :  { %v451_v61 = vrot.slane %v447_v59, 4 }
 0x639   :  { %460 = vrot.lane.b32.xlu0 %v451_v61, %s2566_s21  ;;  %v453_v62 = vadd.f32 %v451_v61, %v2730_v19 }
 0x63b   :  { %v2067_v63 = vmul.f32 -1.442695, %v453_v62 }
 0x63d   :  { %2442 = vpow2.f32 %v2067_v63 }
 0x64a   :  { %v2443_v1 = vpop.eup %2442 }
 0x64b   :  { %v457_v3 = vadd.f32 1.0, %v2443_v1 }
 0x64d   :  { %2444 = vrcp.f32 %v457_v3 }
 0x65a   :  { %v2445_v5 = vpop.eup %2444 }
 0x65b   :  { %v470_v14 = vsub.f32 1.0, %v2445_v5  ;;  %v478_v18 = vmul.f32 %v2445_v5, %v476_v15 }
 0x6ab   :  { %v461_v7 = vpop.permute.xlu0 %460 }
 0x6ac   :  { %v463_v9 = vmul.f32 %v2445_v5, %v461_v7 }
 0x6ae   :  { %465 = vrot.lane.b32.xlu1 %v463_v9, %s2566_s21 }
 0x720   :  { %v466_v10 = vpop.permute.xlu1 %465 }
 0x721   :  { %v468_v12 = vadd.f32 %v466_v10, %v2730_v19 }
 0x723   :  { %2446 = vtanh.f32 %v468_v12 }
 0x730   :  { %v2447_v13 = vpop.eup %2446 }
 0x731   :  { %472 = vrot.lane.b32.xlu0 %v2447_v13, %s2567_s5 }
 0x7a3   :  { %v473_v17 = vpop.permute.xlu0 %472 }
 0x7a4   :  { %v475_v20 = vmul.f32 %v473_v17, %v470_v14 }
 0x7a6   :  { %v479_v21 = vadd.f32 %v478_v18, %v475_v20 }
 0x7a8   :  { %v481_v23 = vrot.slane %v479_v21, 4  ;;  %v1009_v24 = vsel %vm1008_vm3, %v1007_v22, %v479_v21  ;;  %v582_v41 = vrot.slane %v479_v21, 6 }
 0x7aa   :  { %482 = vrot.lane.b32.xlu1 %v481_v23, %s2567_s5 }
 0x81c   :  { %v483_v25 = vpop.permute.xlu1 %482 }
 0x81d   :  { %2229 = vmatmul.mubr.msk.f32.vlgmr.msra.gmra.mxu0 %vm77_vm1, %v483_v25 }
 0x81e   :  { %2243 = vmatpush3.msra.mxu0 %v2660_v2  ;;  %2250 = vmatprep.mubr.msk.f32.mxu0 %vm2565_vm0, %v3434_v0 }
 0x81f   :  { %2244 = vmatprep.subr.mxu0 %v3434_v0 }
 0x820   :  { %2245 = vmatpush3.msra.mxu0 %v2669_v4 }
 0x821   :  { %2246 = vmatprep.subr.mxu0 %v3434_v0 }
 0x822   :  { %2247 = vmatpush3.msra.mxu0 %v2678_v6 }
 0x823   :  { %2248 = vmatprep.subr.mxu0 %v3434_v0 }
 0x824   :  { %2249 = vmatpush3.msra.mxu0 %v2688_v8 }
 0x825   :  { %2264 = vmatprep.subr.mxu0 %v3434_v0 }
 0x8dd   :  { %v552_v26 = vpop.f32.mrf.mxu0 }
 0x8de   :  { %v553_v27 = vadd.f32 %v2721_v11, %v552_v26 }
 0x8df   :  { %v2230_v28 = vpop.f32.mrf.mxu0 }
 0x8e0   :  { %v557_v29 = vrot.slane %v553_v27, 2 }
 0x8e2   :  { %566 = vrot.lane.b32.xlu0 %v557_v29, %s2566_s21  ;;  %v559_v30 = vadd.f32 %v557_v29, %v2730_v19 }
 0x8e4   :  { %v2069_v31 = vmul.f32 -1.442695, %v559_v30 }
 0x8e6   :  { %2448 = vpow2.f32 %v2069_v31 }
 0x8f3   :  { %v2449_v32 = vpop.eup %2448 }
 0x8f4   :  { %v563_v33 = vadd.f32 1.0, %v2449_v32 }
 0x8f6   :  { %2450 = vrcp.f32 %v563_v33 }
 0x903   :  { %v2451_v34 = vpop.eup %2450 }
 0x904   :  { %v576_v40 = vsub.f32 1.0, %v2451_v34  ;;  %v584_v43 = vmul.f32 %v2451_v34, %v582_v41 }
 0x954   :  { %v567_v35 = vpop.permute.xlu0 %566 }
 0x955   :  { %v569_v36 = vmul.f32 %v2451_v34, %v567_v35 }
 0x957   :  { %571 = vrot.lane.b32.xlu1 %v569_v36, %s2566_s21 }
 0x9c9   :  { %v572_v37 = vpop.permute.xlu1 %571 }
 0x9ca   :  { %v574_v38 = vadd.f32 %v572_v37, %v2730_v19 }
 0x9cc   :  { %2452 = vtanh.f32 %v574_v38 }
 0x9d9   :  { %v2453_v39 = vpop.eup %2452 }
 0x9da   :  { %578 = vrot.lane.b32.xlu0 %v2453_v39, %s2567_s5 }
 0xa4c   :  { %v579_v42 = vpop.permute.xlu0 %578 }
 0xa4d   :  { %v581_v44 = vmul.f32 %v579_v42, %v576_v40 }
 0xa4f   :  { %v585_v45 = vadd.f32 %v584_v43, %v581_v44 }
 0xa51   :  { %v587_v46 = vrot.slane %v585_v45, 6  ;;  %v2798_v47 = vsel %vm1010_vm4, %v1009_v24, %v585_v45 }
 0xa53   :  { %588 = vrot.lane.b32.xlu1 %v587_v46, %s2567_s5 }
 0xac5   :  { %v589_v48 = vpop.permute.xlu1 %588 }
 0xac6   :  { %2240 = vmatmul.mubr.msk.f32.vlgmr.msra.gmra.mxu1 %vm77_vm1, %v589_v48 }
 0xac7   :  { %2254 = vmatpush3.msra.mxu1 %v2660_v2  ;;  %2261 = vmatprep.mubr.msk.f32.mxu1 %vm2565_vm0, %v3434_v0 }
 0xac8   :  { %2255 = vmatprep.subr.mxu1 %v3434_v0 }
 0xac9   :  { %2256 = vmatpush3.msra.mxu1 %v2669_v4 }
 0xaca   :  { %2257 = vmatprep.subr.mxu1 %v3434_v0 }
 0xacb   :  { %2258 = vmatpush3.msra.mxu1 %v2678_v6 }
 0xacc   :  { %2259 = vmatprep.subr.mxu1 %v3434_v0 }
 0xacd   :  { %2260 = vmatpush3.msra.mxu1 %v2688_v8 }
 0xb86   :  { %v658_v19 = vpop.f32.mrf.mxu1 }
 0xb87   :  { %v659_v49 = vadd.f32 %v2721_v11, %v658_v19 }
 0xb88   :  { %v2241_v50 = vpop.f32.mrf.mxu1 }
 0xb89   :  { %670 = vrot.lane.b32.xlu0 %v659_v49, %s2566_s21  ;;  %v662_v51 = vadd.f32 %v659_v49, %v2727_v16 }
 0xb8b   :  { %v2071_v52 = vmul.f32 -1.442695, %v662_v51 }
 0xb8d   :  { %2454 = vpow2.f32 %v2071_v52 }
 0xb9a   :  { %v2455_v53 = vpop.eup %2454 }
 0xb9b   :  { %v666_v54 = vadd.f32 1.0, %v2455_v53  ;;  %v1133_v53 = vld [vmem:[%s3424_s1 + $0x18] sm:$0xff] }
 0xb9d   :  { %2456 = vrcp.f32 %v666_v54  ;;  %v1132_v54 = vld [vmem:[%s3424_s1 + $0x10] sm:$0xff] }
 0xbaa   :  { %v2457_v55 = vpop.eup %2456 }
 0xbab   :  { %v680_v61 = vsub.f32 1.0, %v2457_v55  ;;  %v687_v63 = vmul.f32 %v2457_v55, %v587_v46 }
 0xbfb   :  { %v671_v56 = vpop.permute.xlu0 %670 }
 0xbfc   :  { %v673_v57 = vmul.f32 %v2457_v55, %v671_v56  ;;  %v1126_v55 = vld [vmem:[%s3430_s7] sm:$0xff]  ;;  %v1131_v56 = vld [vmem:[%s3424_s1 + $0x8] sm:$0xff] }
 0xbfe   :  { %675 = vrot.lane.b32.xlu1 %v673_v57, %s2566_s21  ;;  %v1130_v57 = vld [vmem:[%s3424_s1] sm:$0xff] }
 0xc70   :  { %v676_v58 = vpop.permute.xlu1 %675 }
 0xc71   :  { %v678_v59 = vadd.f32 %v676_v58, %v2727_v16 }
 0xc73   :  { %2458 = vtanh.f32 %v678_v59  ;;  %v1127_v59 = vld [vmem:[%s3430_s7 + $0x8] sm:$0xff] }
 0xc80   :  { %v2459_v60 = vpop.eup %2458 }
 0xc81   :  { %682 = vrot.lane.b32.xlu0 %v2459_v60, %s2567_s5 }
 0xcf3   :  { %v683_v62 = vpop.permute.xlu0 %682 }
 0xcf4   :  { %v685_v1 = vmul.f32 %v683_v62, %v680_v61  ;;  %v1128_v61 = vld [vmem:[%s3430_s7 + $0x10] sm:$0xff] }
 0xcf6   :  { %v2817_v3 = vadd.f32 %v687_v63, %v685_v1  ;;  %v1129_v1 = vld [vmem:[%s3430_s7 + $0x18] sm:$0xff] }
 0xcf8   :  { %690 = vrot.lane.b32.xlu1 %v2817_v3, %s2567_s5  ;;  %v790_v22 = vrot.slane %v2817_v3, 6 }
 0xd6a   :  { %v691_v5 = vpop.permute.xlu1 %690 }
 0xd6b   :  { %2251 = vmatmul.mubr.msk.f32.vlgmr.msra.gmra.mxu0 %vm77_vm1, %v691_v5 }
 0xd6c   :  { %2265 = vmatpush3.msra.mxu0 %v2660_v2  ;;  %2272 = vmatprep.mubr.msk.f32.mxu0 %vm2565_vm0, %v3434_v0 }
 0xd6d   :  { %2266 = vmatprep.subr.mxu0 %v3434_v0 }
 0xd6e   :  { %2267 = vmatpush3.msra.mxu0 %v2669_v4 }
 0xd6f   :  { %2268 = vmatprep.subr.mxu0 %v3434_v0 }
 0xd70   :  { %2269 = vmatpush3.msra.mxu0 %v2678_v6 }
 0xd71   :  { %2270 = vmatprep.subr.mxu0 %v3434_v0 }
 0xd72   :  { %2271 = vmatpush3.msra.mxu0 %v2688_v8 }
 0xd73   :  { %2285 = vmatprep.subr.mxu0 %v1133_v53 }
 0xe2b   :  { %v760_v7 = vpop.f32.mrf.mxu0 }
 0xe2c   :  { %v761_v9 = vadd.f32 %v2721_v11, %v760_v7 }
 0xe2d   :  { %v2252_v10 = vpop.f32.mrf.mxu0 }
 0xe2e   :  { %v765_v2 = vrot.slane %v761_v9, 6 }
 0xe30   :  { %774 = vrot.lane.b32.xlu0 %v765_v2, %s2566_s21  ;;  %v767_v12 = vadd.f32 %v765_v2, %v2727_v16 }
 0xe32   :  { %v2073_v13 = vmul.f32 -1.442695, %v767_v12  ;;  %v2092_v12 = vld [vmem:[%s3424_s1 + $0x38] sm:$0xff] }
 0xe34   :  { %2460 = vpow2.f32 %v2073_v13  ;;  %v2091_v13 = vld [vmem:[%s3424_s1 + $0x30] sm:$0xff] }
 0xe41   :  { %v2461_v4 = vpop.eup %2460 }
 0xe42   :  { %v771_v14 = vadd.f32 1.0, %v2461_v4  ;;  %v2090_v4 = vld [vmem:[%s3424_s1 + $0x28] sm:$0xff] }
 0xe44   :  { %2462 = vrcp.f32 %v771_v14  ;;  %v2089_v14 = vld [vmem:[%s3424_s1 + $0x20] sm:$0xff]  ;;  %s2568_s1 = smov 16  }
 0xe51   :  { %v2463_v15 = vpop.eup %2462 }
 0xe52   :  { %v784_v21 = vsub.f32 1.0, %v2463_v15  ;;  %v792_v25 = vmul.f32 %v2463_v15, %v790_v22 }
 0xea2   :  { %v775_v6 = vpop.permute.xlu0 %774 }
 0xea3   :  { %v777_v17 = vmul.f32 %v2463_v15, %v775_v6 }
 0xea5   :  { %779 = vrot.lane.b32.xlu1 %v777_v17, %s2566_s21 }
 0xf17   :  { %v780_v8 = vpop.permute.xlu1 %779 }
 0xf18   :  { %v782_v18 = vadd.f32 %v780_v8, %v2727_v16 }
 0xf1a   :  { %2464 = vtanh.f32 %v782_v18 }
 0xf27   :  { %v2465_v20 = vpop.eup %2464 }
 0xf28   :  { %786 = vrot.lane.b32.xlu0 %v2465_v20, %s2567_s5 }
 0xf9a   :  { %v787_v23 = vpop.permute.xlu0 %786 }
 0xf9b   :  { %v789_v24 = vmul.f32 %v787_v23, %v784_v21 }
 0xf9d   :  { %v793_v26 = vadd.f32 %v792_v25, %v789_v24  ;;  %v1015_v24 = vld [vmem:[#allocation5] sm:$0xff] }
 0xf9f   :  { %v795_v27 = vrot.slane %v793_v26, 2  ;;  %v896_v44 = vrot.slane %v793_v26, 6  ;;  %v1012_v49 = vsel %vm1006_vm2, %v2817_v3, %v793_v26 }
 0xfa1   :  { %796 = vrot.lane.b32.xlu1 %v795_v27, %s2567_s5 }
0x1013   :  { %v797_v28 = vpop.permute.xlu1 %796 }
0x1014   :  { %2262 = vmatmul.mubr.msk.f32.vlgmr.msra.gmra.mxu1 %vm77_vm1, %v797_v28 }
0x1015   :  { %2279 = vmatprep.mubr.msk.f32.mxu1 %vm77_vm1, %v1015_v24 }
0x10d4   :  { %v866_v29 = vpop.f32.mrf.mxu1 }
0x10d5   :  { %v867_v30 = vadd.f32 %v2721_v11, %v866_v29 }
0x10d6   :  { %v2263_v31 = vpop.f32.mrf.mxu1 }
0x10d7   :  { %v871_v32 = vrot.slane %v867_v30, 4 }
0x10d9   :  { %880 = vrot.lane.b32.xlu0 %v871_v32, %s2566_s21  ;;  %v873_v33 = vadd.f32 %v871_v32, %v2727_v16 }
0x10db   :  { %v2075_v34 = vmul.f32 -1.442695, %v873_v33 }
0x10dd   :  { %2466 = vpow2.f32 %v2075_v34 }
0x10ea   :  { %v2467_v35 = vpop.eup %2466 }
0x10eb   :  { %v877_v36 = vadd.f32 1.0, %v2467_v35 }
0x10ed   :  { %2468 = vrcp.f32 %v877_v36 }
0x10fa   :  { %v2469_v37 = vpop.eup %2468 }
0x10fb   :  { %v890_v43 = vsub.f32 1.0, %v2469_v37  ;;  %v898_v46 = vmul.f32 %v2469_v37, %v896_v44 }
0x114b   :  { %v881_v38 = vpop.permute.xlu0 %880 }
0x114c   :  { %v883_v39 = vmul.f32 %v2469_v37, %v881_v38 }
0x114e   :  { %885 = vrot.lane.b32.xlu1 %v883_v39, %s2566_s21 }
0x11c0   :  { %v886_v40 = vpop.permute.xlu1 %885 }
0x11c1   :  { %v888_v41 = vadd.f32 %v886_v40, %v2727_v16 }
0x11c3   :  { %2470 = vtanh.f32 %v888_v41 }
0x11d0   :  { %v2471_v42 = vpop.eup %2470 }
0x11d1   :  { %892 = vrot.lane.b32.xlu0 %v2471_v42, %s2567_s5 }
0x1243   :  { %v893_v45 = vpop.permute.xlu0 %892 }
0x1244   :  { %v895_v48 = vmul.f32 %v893_v45, %v890_v43 }
0x1246   :  { %v2846_v19 = vadd.f32 %v898_v46, %v895_v48 }
0x1248   :  { %v901_v50 = vrot.slane %v2846_v19, 4  ;;  %v2853_v51 = vsel %vm1008_vm3, %v1012_v49, %v2846_v19  ;;  %v1002_v26 = vrot.slane %v2846_v19, 6 }
0x124a   :  { %902 = vrot.lane.b32.xlu1 %v901_v50, %s2567_s5 }
0x12bc   :  { %v903_v52 = vpop.permute.xlu1 %902 }
0x12bd   :  { %2273 = vmatmul.mubr.msk.f32.vlgmr.msra.gmra.mxu0 %vm77_vm1, %v903_v52 }
0x12be   :  { %2286 = vmatpush3.msra.mxu0 %v1133_v53  ;;  %2293 = vmatprep.mubr.msk.f32.mxu0 %vm77_vm1, %v1126_v55 }
0x12bf   :  { %2287 = vmatprep.subr.mxu0 %v1132_v54 }
0x12c0   :  { %2288 = vmatpush3.msra.mxu0 %v1132_v54 }
0x12c1   :  { %2289 = vmatprep.subr.mxu0 %v1131_v56 }
0x12c2   :  { %2290 = vmatpush3.msra.mxu0 %v1131_v56 }
0x12c3   :  { %2291 = vmatprep.subr.mxu0 %v1130_v57 }
0x12c4   :  { %2292 = vmatpush3.msra.mxu0 %v1130_v57 }
0x12c5   :  { %2294 = vmatmul.mubr.msk.f32.vlgmr.msra.gmra.mxu0 %vm77_vm1, %v1127_v59  ;;  %2310 = vmatprep.subr.mxu0 %v2092_v12 }
0x12c6   :  { %2296 = vmatprep.mubr.msk.f32.mxu0 %vm77_vm1, %v1128_v61  ;;  %2311 = vmatpush3.msra.mxu0 %v2092_v12 }
0x12c7   :  { %2312 = vmatprep.subr.mxu0 %v2091_v13 }
0x12c8   :  { %2313 = vmatpush3.msra.mxu0 %v2091_v13 }
0x12c9   :  { %2297 = vmatmul.mubr.msk.f32.gmra.mxu0 %vm77_vm1, %v1129_v1  ;;  %2314 = vmatprep.subr.mxu0 %v2090_v4 }
0x12ca   :  { %2318 = vmatprep.mubr.msk.f32.mxu0 %vm77_vm1, %v1126_v55  ;;  %2315 = vmatpush3.msra.mxu0 %v2090_v4 }
0x12cb   :  { %2316 = vmatprep.subr.mxu0 %v2089_v14 }
0x12cc   :  { %2317 = vmatpush3.msra.mxu0 %v2089_v14 }
0x12cd   :  { %2319 = vmatmul.mubr.msk.f32.vlgmr.msra.gmra.mxu0 %vm77_vm1, %v1127_v59 }
0x12ce   :  { %2321 = vmatprep.mubr.msk.f32.mxu0 %vm77_vm1, %v1128_v61  ;;  %v2573_v61 = vmov 0  }
0x12cf   :  { %2365 = vset.pattern.permute.xlu0 %v2573_v61 }
0x12d1   :  { %2322 = vmatmul.mubr.msk.f32.gmra.mxu0 %vm77_vm1, %v1129_v1 }
0x137d   :  { %v972_v58 = vpop.f32.mrf.mxu0 }
0x137e   :  { %v973_v60 = vadd.f32 %v2721_v11, %v972_v58 }
0x137f   :  { %v2274_v62 = vpop.f32.mrf.mxu0 }
0x1380   :  { %v977_v63 = vrot.slane %v973_v60, 2  ;;  %v3439_v62 = vmov 6  }
0x1381   :  { %2368 = vset.pattern.permute.xlu1 %v3439_v62 }
0x1382   :  { %986 = vrot.lane.b32.xlu0 %v977_v63, %s2566_s21  ;;  %v979_v11 = vadd.f32 %v977_v63, %v2727_v16 }
0x1384   :  { %v2077_v3 = vmul.f32 -1.442695, %v979_v11  ;;  %v1016_v11 = vld [vmem:[#allocation5 + $0x8] sm:$0xff] }
0x1385   :  { %v2295_v8 = vpop.f32.mrf.mxu0 }
0x1386   :  { %2472 = vpow2.f32 %v2077_v3  ;;  %v1017_v3 = vld [vmem:[#allocation5 + $0x10] sm:$0xff] }
0x1387   :  { %v2912_v18 = vpop.f32.mrf.mxu0 }
0x1389   :  { %v2298_v20 = vpop.f32.mrf.mxu0 }
0x1393   :  { %v2473_v5 = vpop.eup %2472 }
0x1394   :  { %v983_v7 = vadd.f32 1.0, %v2473_v5 }
0x1396   :  { %2474 = vrcp.f32 %v983_v7  ;;  %v1018_v7 = vld [vmem:[#allocation5 + $0x18] sm:$0xff] }
0x13a3   :  { %v2889_v9 = vpop.eup %2474 }
0x13a4   :  { %v996_v25 = vsub.f32 1.0, %v2889_v9  ;;  %v1004_v28 = vmul.f32 %v2889_v9, %v1002_v26 }
0x13f4   :  { %v987_v10 = vpop.permute.xlu0 %986 }
0x13f5   :  { %v989_v2 = vmul.f32 %v2889_v9, %v987_v10 }
0x13f7   :  { %991 = vrot.lane.b32.xlu1 %v989_v2, %s2566_s21 }
0x1469   :  { %v992_v15 = vpop.permute.xlu1 %991 }
0x146a   :  { %v994_v6 = vadd.f32 %v992_v15, %v2727_v16  ;;  %v2928_v16 = vpop.f32.mrf.mxu0 }
0x146c   :  { %2476 = vtanh.f32 %v994_v6 }
0x1479   :  { %v2477_v17 = vpop.eup %2476 }
0x147a   :  { %998 = vrot.lane.b32.xlu0 %v2477_v17, %s2567_s5 }
0x147e   :  { %1021 = vrot.lane.b32.xlu0 %v2798_v47, %s2567_s5  ;;  %v2930_v47 = vpop.f32.mrf.mxu0 }
0x1480   :  { %v2932_v21 = vpop.f32.mrf.mxu0 }
0x1482   :  { %1237 = vrot.lane.b32.xlu0 %v2295_v8, %s2568_s1  ;;  %v2934_v22 = vpop.f32.mrf.mxu0 }
0x1484   :  { %v2940_v23 = vpop.f32.mrf.mxu0 }
0x1486   :  { %1241 = vrot.lane.b32.xlu0 %v2298_v20, %s2568_s1 }
0x148a   :  { %1249 = vrot.lane.b32.xlu0 %v2295_v8, %s2569_s20 }
0x148e   :  { %1253 = vrot.lane.b32.xlu0 %v2298_v20, %s2569_s20 }
0x1492   :  { %1261 = vrot.lane.b32.xlu0 %v2295_v8, %s2570_s6 }
0x1496   :  { %1265 = vrot.lane.b32.xlu0 %v2298_v20, %s2570_s6 }
0x149a   :  { %1273 = vrot.lane.b32.xlu0 %v2295_v8, %s2566_s21 }
0x149e   :  { %1277 = vrot.lane.b32.xlu0 %v2298_v20, %s2566_s21 }
0x14a2   :  { %1285 = vrot.lane.b32.xlu0 %v2295_v8, %s2571_s22 }
0x14a6   :  { %1289 = vrot.lane.b32.xlu0 %v2298_v20, %s2571_s22 }
0x14aa   :  { %1297 = vrot.lane.b32.xlu0 %v2295_v8, %s2567_s5 }
0x14ae   :  { %1301 = vrot.lane.b32.xlu0 %v2298_v20, %s2567_s5 }
0x14b2   :  { %1309 = vrot.lane.b32.xlu0 %v2295_v8, %s2572_s23 }
0x14b6   :  { %1313 = vrot.lane.b32.xlu0 %v2298_v20, %s2572_s23 }
0x14ba   :  { %1719 = vrot.lane.b32.xlu0 %v2934_v22, %s2570_s6 }
0x14be   :  { %1731 = vrot.lane.b32.xlu0 %v2934_v22, %s2566_s21 }
0x14c2   :  { %1717 = vrot.lane.b32.xlu0 %v2940_v23, %s2570_s6 }
0x14c6   :  { %1729 = vrot.lane.b32.xlu0 %v2940_v23, %s2566_s21 }
0x14ca   :  { %1715 = vrot.lane.b32.xlu0 %v2930_v47, %s2570_s6 }
0x14ce   :  { %1767 = vrot.lane.b32.xlu0 %v2934_v22, %s2572_s23 }
0x14d2   :  { %1701 = vrot.lane.b32.xlu0 %v2932_v21, %s2569_s20 }
0x14d6   :  { %1753 = vrot.lane.b32.xlu0 %v2940_v23, %s2567_s5 }
0x14da   :  { %1713 = vrot.lane.b32.xlu0 %v2932_v21, %s2570_s6 }
0x14de   :  { %1765 = vrot.lane.b32.xlu0 %v2940_v23, %s2572_s23 }
0x14e2   :  { %1751 = vrot.lane.b32.xlu0 %v2930_v47, %s2567_s5 }
0x14ec   :  { %v999_v27 = vpop.permute.xlu0 %998 }
0x14ed   :  { %v1001_v29 = vmul.f32 %v999_v27, %v996_v25 }
0x14ef   :  { %v1005_v30 = vadd.f32 %v1004_v28, %v1001_v29 }
0x14f0   :  { %v2960_v31 = vpop.permute.xlu0 %1021 }
0x14f1   :  { %v1014_v32 = vsel %vm1010_vm4, %v2853_v51, %v1005_v30 }
0x14f2   :  { %1023 = vrot.lane.b32.xlu1 %v1014_v32, %s2567_s5 }
0x14f4   :  { %v1238_v33 = vpop.permute.xlu0 %1237 }
0x14f5   :  { %v1321_v35 = vsel %vm1319_vm5, %v2295_v8, %v1238_v33 }
0x14f6   :  { %1235 = vrot.lane.b32.xlu1 %v2912_v18, %s2568_s1 }
0x14f8   :  { %v1242_v34 = vpop.permute.xlu0 %1241 }
0x14f9   :  { %v1323_v38 = vsel %vm1319_vm5, %v2298_v20, %v1242_v34 }
0x14fa   :  { %1239 = vrot.lane.b32.xlu1 %v2928_v16, %s2568_s1 }
0x14fc   :  { %v1250_v36 = vpop.permute.xlu0 %1249 }
0x14fd   :  { %v1325_v37 = vsel %vm77_vm1, %v1321_v35, %v1250_v36 }
0x14fe   :  { %1247 = vrot.lane.b32.xlu1 %v2912_v18, %s2569_s20 }
0x1500   :  { %v1254_v39 = vpop.permute.xlu0 %1253 }
0x1501   :  { %v1327_v40 = vsel %vm77_vm1, %v1323_v38, %v1254_v39 }
0x1502   :  { %1251 = vrot.lane.b32.xlu1 %v2928_v16, %s2569_s20 }
0x1504   :  { %v1262_v41 = vpop.permute.xlu0 %1261 }
0x1505   :  { %v1330_v42 = vsel %vm1328_vm6, %v1325_v37, %v1262_v41 }
0x1506   :  { %1259 = vrot.lane.b32.xlu1 %v2912_v18, %s2570_s6 }
0x1508   :  { %v1266_v43 = vpop.permute.xlu0 %1265 }
0x1509   :  { %v1332_v44 = vsel %vm1328_vm6, %v1327_v40, %v1266_v43 }
0x150a   :  { %1263 = vrot.lane.b32.xlu1 %v2928_v16, %s2570_s6 }
0x150c   :  { %v1274_v45 = vpop.permute.xlu0 %1273 }
0x150d   :  { %v1335_v46 = vsel %vm1333_vm7, %v1330_v42, %v1274_v45 }
0x150e   :  { %1271 = vrot.lane.b32.xlu1 %v2912_v18, %s2566_s21 }
0x1510   :  { %v1278_v48 = vpop.permute.xlu0 %1277 }
0x1511   :  { %v1337_v19 = vsel %vm1333_vm7, %v1332_v44, %v1278_v48  ;;  %v3438_v48 = vmov 8  }
0x1512   :  { %1275 = vrot.lane.b32.xlu1 %v2928_v16, %s2566_s21 }
0x1514   :  { %v1286_v49 = vpop.permute.xlu0 %1285 }
0x1515   :  { %v1340_v50 = vsel %vm1338_vm8, %v1335_v46, %v1286_v49  ;;  %v3436_v49 = vmov 10  }
0x1516   :  { %1283 = vrot.lane.b32.xlu1 %v2912_v18, %s2571_s22 }
0x1518   :  { %v1290_v51 = vpop.permute.xlu0 %1289 }
0x1519   :  { %v1342_v52 = vsel %vm1338_vm8, %v1337_v19, %v1290_v51  ;;  %v2576_v19 = vmov 2   ;;  %v2579_v51 = vmov 12  }
0x151a   :  { %1287 = vrot.lane.b32.xlu1 %v2928_v16, %s2571_s22 }
0x151c   :  { %v1298_v53 = vpop.permute.xlu0 %1297 }
0x151d   :  { %v1345_v54 = vsel %vm1343_vm9, %v1340_v50, %v1298_v53  ;;  %v2578_v50 = vmov 4   ;;  %v2581_v53 = vmov 14  }
0x151e   :  { %1295 = vrot.lane.b32.xlu1 %v2912_v18, %s2567_s5 }
0x1520   :  { %v1302_v55 = vpop.permute.xlu0 %1301 }
0x1521   :  { %v1347_v56 = vsel %vm1343_vm9, %v1342_v52, %v1302_v55  ;;  %v3437_v52 = vmov 1   ;;  %v2583_v55 = vmov 3  }
0x1522   :  { %1299 = vrot.lane.b32.xlu1 %v2928_v16, %s2567_s5 }
0x1524   :  { %v1310_v57 = vpop.permute.xlu0 %1309 }
0x1525   :  { %v3006_v58 = vsel %vm1348_vm10, %v1345_v54, %v1310_v57  ;;  %v2582_v54 = vmov 9  }
0x1526   :  { %1307 = vrot.lane.b32.xlu1 %v2912_v18, %s2572_s23 }
0x1528   :  { %v1314_v59 = vpop.permute.xlu0 %1313 }
0x1529   :  { %v3011_v60 = vsel %vm1348_vm10, %v1347_v56, %v1314_v59  ;;  %v2584_v56 = vmov 11   ;;  %v2585_v59 = vmov 5  }
0x152a   :  { %1311 = vrot.lane.b32.xlu1 %v2928_v16, %s2572_s23 }
0x152c   :  { %v3091_v28 = vpop.permute.xlu0 %1719 }
0x152e   :  { %1695 = vrot.lane.b32.xlu1 %v2934_v22, %s2568_s1 }
0x1530   :  { %v3093_v30 = vpop.permute.xlu0 %1731 }
0x1532   :  { %1707 = vrot.lane.b32.xlu1 %v2934_v22, %s2569_s20 }
0x1534   :  { %v3097_v33 = vpop.permute.xlu0 %1717 }
0x1536   :  { %1693 = vrot.lane.b32.xlu1 %v2940_v23, %s2568_s1 }
0x1538   :  { %v3101_v35 = vpop.permute.xlu0 %1729 }
0x153a   :  { %1705 = vrot.lane.b32.xlu1 %v2940_v23, %s2569_s20 }
0x153c   :  { %v1716_v40 = vpop.permute.xlu0 %1715 }
0x153e   :  { %1691 = vrot.lane.b32.xlu1 %v2930_v47, %s2568_s1 }
0x1542   :  { %1743 = vrot.lane.b32.xlu1 %v2934_v22, %s2571_s22 }
0x1546   :  { %1703 = vrot.lane.b32.xlu1 %v2930_v47, %s2569_s20 }
0x154a   :  { %1755 = vrot.lane.b32.xlu1 %v2934_v22, %s2567_s5 }
0x154e   :  { %1689 = vrot.lane.b32.xlu1 %v2932_v21, %s2568_s1 }
0x1552   :  { %1741 = vrot.lane.b32.xlu1 %v2940_v23, %s2571_s22 }
0x1556   :  { %1727 = vrot.lane.b32.xlu1 %v2930_v47, %s2566_s21 }
0x155a   :  { %1739 = vrot.lane.b32.xlu1 %v2930_v47, %s2571_s22 }
0x155e   :  { %1725 = vrot.lane.b32.xlu1 %v2932_v21, %s2566_s21 }
0x1564   :  { %v1024_v63 = vpop.permute.xlu1 %1023 }
0x1565   :  { %2275 = vmatprep.subr.msk.mxu1 %vm77_vm1, %v1024_v63 }
0x1566   :  { %2276 = vmatpush3.xpose.msk.msra.mxu1 %vm77_vm1, %v1024_v63  ;;  %v2586_v63 = vmov 7  }
0x1567   :  { %2277 = vmatprep.subr.msk.mxu1 %vm77_vm1, %v2960_v31 }
0x1568   :  { %v3047_v1 = vpop.permute.xlu1 %1235 }
0x156a   :  { %2278 = vmatpush3.xpose.msk.msra.mxu1 %vm77_vm1, %v2960_v31 }
0x156b   :  { %2299 = vmatprep.subr.mxu1 %v3434_v0 }
0x156c   :  { %v3052_v5 = vpop.permute.xlu1 %1239 }
0x156d   :  { %2280 = vmatmul.mubr.msk.f32.vlgmr.msra.gmra.mxu1 %vm77_vm1, %v1016_v11  ;;  %v2587_v11 = vmov 13  }
0x156e   :  { %2282 = vmatprep.mubr.msk.f32.mxu1 %vm77_vm1, %v1017_v3  ;;  %v2588_v3 = vmov 15  }
0x1570   :  { %v3056_v9 = vpop.permute.xlu1 %1247 }
0x1571   :  { %2283 = vmatmul.mubr.msk.f32.gmra.mxu1 %vm77_vm1, %v1018_v7 }
0x1572   :  { %2307 = vmatprep.mubr.msk.f32.mxu1 %vm2565_vm0, %v3434_v0 }
0x1574   :  { %v3061_v10 = vpop.permute.xlu1 %1251 }
0x1578   :  { %v3063_v2 = vpop.permute.xlu1 %1259 }
0x157c   :  { %v3065_v12 = vpop.permute.xlu1 %1263 }
0x1580   :  { %v3067_v13 = vpop.permute.xlu1 %1271 }
0x1584   :  { %v3069_v4 = vpop.permute.xlu1 %1275 }
0x1588   :  { %v3071_v14 = vpop.permute.xlu1 %1283 }
0x158c   :  { %v3073_v15 = vpop.permute.xlu1 %1287 }
0x1590   :  { %v3075_v6 = vpop.permute.xlu1 %1295 }
0x1594   :  { %v3077_v17 = vpop.permute.xlu1 %1299 }
0x1598   :  { %v3079_v8 = vpop.permute.xlu1 %1307 }
0x159c   :  { %v3081_v20 = vpop.permute.xlu1 %1311 }
0x15a0   :  { %v3083_v24 = vpop.permute.xlu1 %1695 }
0x15a4   :  { %v3085_v25 = vpop.permute.xlu1 %1707 }
0x15a8   :  { %v3087_v26 = vpop.permute.xlu1 %1693 }
0x15ac   :  { %v3089_v27 = vpop.permute.xlu1 %1705 }
0x15b0   :  { %v1692_v29 = vpop.permute.xlu1 %1691 }
0x15b1   :  { %v1774_v37 = vsel %vm1319_vm5, %v2930_v47, %v1692_v29 }
0x15b4   :  { %v3095_v31 = vpop.permute.xlu1 %1743 }
0x15b8   :  { %v1704_v32 = vpop.permute.xlu1 %1703 }
0x15b9   :  { %v1778_v38 = vsel %vm77_vm1, %v1774_v37, %v1704_v32  ;;  %v3159_v32 = vpop.permute.xlu0 %1767 }
0x15ba   :  { %v1782_v41 = vsel %vm1328_vm6, %v1778_v38, %v1716_v40 }
0x15bc   :  { %v3099_v34 = vpop.permute.xlu1 %1755 }
0x15bd   :  { %v3166_v37 = vpop.permute.xlu0 %1701 }
0x15c0   :  { %v3103_v36 = vpop.permute.xlu1 %1689 }
0x15c1   :  { %v3173_v38 = vpop.permute.xlu0 %1753 }
0x15c4   :  { %v3108_v39 = vpop.permute.xlu1 %1741 }
0x15c5   :  { %v3179_v40 = vpop.permute.xlu0 %1713 }
0x15c6   :  { %3440 = vst [vmem:[#allocation11_spill] sm:$0xff] %v3179_v40 }
0x15c8   :  { %v1728_v42 = vpop.permute.xlu1 %1727 }
0x15c9   :  { %v1786_v43 = vsel %vm1333_vm7, %v1782_v41, %v1728_v42  ;;  %v3186_v41 = vpop.permute.xlu0 %1765 }
0x15ca   :  { %3441 = vst [vmem:[#allocation12_spill] sm:$0xff] %v3186_v41 }
0x15cc   :  { %v1740_v44 = vpop.permute.xlu1 %1739 }
0x15cd   :  { %v3113_v45 = vsel %vm1338_vm8, %v1786_v43, %v1740_v44  ;;  %v3194_v43 = vpop.permute.xlu0 %1751 }
0x15d0   :  { %v3192_v42 = vpop.permute.xlu1 %1725 }
0x15d1   :  { %3442 = vst [vmem:[#allocation13_spill] sm:$0xff] %v3192_v42 }
0x162d   :  { %v2281_v46 = vpop.f32.mrf.mxu1 }
0x162e   :  { %1410 = vperm.xlu1 %2368, %v2281_v46   ;;  %1360 = vperm.xlu0 %2365, %v2281_v46  }
0x162f   :  { %v1107_v57 = vpop.f32.mrf.mxu1 }
0x1631   :  { %v3137_v7 = vpop.f32.mrf.mxu1 }
0x1632   :  { %2369 = vset.pattern.permute.xlu1 %v3438_v48  ;;  %2366 = vset.pattern.permute.xlu0 %v2576_v19 }
0x1633   :  { %1426 = vperm.xlu1 %2369, %v2281_v46   ;;  %1378 = vperm.xlu0 %2366, %v2281_v46   ;;  %v3151_v29 = vpop.f32.mrf.mxu1 }
0x1637   :  { %2370 = vset.pattern.permute.xlu1 %v3436_v49  ;;  %2367 = vset.pattern.permute.xlu0 %v2578_v50 }
0x1638   :  { %1442 = vperm.xlu1 %2370, %v2281_v46   ;;  %1394 = vperm.xlu0 %2367, %v2281_v46  }
0x163c   :  { %2371 = vset.pattern.permute.xlu1 %v2579_v51  ;;  %2373 = vset.pattern.permute.xlu0 %v3437_v52 }
0x163d   :  { %1458 = vperm.xlu1 %2371, %v2281_v46   ;;  %1806 = vperm.xlu0 %2373, %v2281_v46  }
0x1641   :  { %2372 = vset.pattern.permute.xlu1 %v2581_v53  ;;  %2377 = vset.pattern.permute.xlu0 %v2582_v54 }
0x1642   :  { %1474 = vperm.xlu1 %2372, %v2281_v46   ;;  %1870 = vperm.xlu0 %2377, %v2281_v46  }
0x1646   :  { %2374 = vset.pattern.permute.xlu1 %v2583_v55  ;;  %2378 = vset.pattern.permute.xlu0 %v2584_v56 }
0x1647   :  { %1822 = vperm.xlu1 %2374, %v2281_v46   ;;  %1886 = vperm.xlu0 %2378, %v2281_v46  }
0x164b   :  { %2375 = vset.pattern.permute.xlu1 %v2585_v59  ;;  %2382 = vset.pattern.permute.xlu0 %v2576_v19 }
0x164c   :  { %1838 = vperm.xlu1 %2375, %v2281_v46   ;;  %1374 = vperm.xlu0 %2382, %v1107_v57  }
0x1650   :  { %2376 = vset.pattern.permute.xlu1 %v2586_v63  ;;  %2385 = vset.pattern.permute.xlu0 %v3438_v48 }
0x1651   :  { %1854 = vperm.xlu1 %2376, %v2281_v46   ;;  %1422 = vperm.xlu0 %2385, %v1107_v57  }
0x1655   :  { %2379 = vset.pattern.permute.xlu1 %v2587_v11  ;;  %2386 = vset.pattern.permute.xlu0 %v3436_v49 }
0x1656   :  { %1902 = vperm.xlu1 %2379, %v2281_v46   ;;  %1438 = vperm.xlu0 %2386, %v1107_v57  }
0x165a   :  { %2380 = vset.pattern.permute.xlu1 %v2588_v3  ;;  %2389 = vset.pattern.permute.xlu0 %v3437_v52 }
0x165b   :  { %1918 = vperm.xlu1 %2380, %v2281_v46   ;;  %1802 = vperm.xlu0 %2389, %v1107_v57  }
0x165f   :  { %2381 = vset.pattern.permute.xlu1 %v2573_v61  ;;  %2393 = vset.pattern.permute.xlu0 %v2582_v54 }
0x1660   :  { %1866 = vperm.xlu0 %2393, %v1107_v57   ;;  %1355 = vperm.xlu1 %2381, %v1107_v57  }
0x1664   :  { %2394 = vset.pattern.permute.xlu0 %v2584_v56  ;;  %2383 = vset.pattern.permute.xlu1 %v2578_v50 }
0x1665   :  { %1882 = vperm.xlu0 %2394, %v1107_v57   ;;  %1390 = vperm.xlu1 %2383, %v1107_v57  }
0x1669   :  { %2398 = vset.pattern.permute.xlu0 %v2576_v19  ;;  %2384 = vset.pattern.permute.xlu1 %v3439_v62 }
0x166a   :  { %1406 = vperm.xlu1 %2384, %v1107_v57   ;;  %1386 = vperm.xlu0 %2398, %v3137_v7  }
0x166e   :  { %2387 = vset.pattern.permute.xlu1 %v2579_v51  ;;  %2400 = vset.pattern.permute.xlu0 %v3439_v62 }
0x166f   :  { %1454 = vperm.xlu1 %2387, %v1107_v57   ;;  %1418 = vperm.xlu0 %2400, %v3137_v7  }
0x1673   :  { %2388 = vset.pattern.permute.xlu1 %v2581_v53  ;;  %2404 = vset.pattern.permute.xlu0 %v2581_v53 }
0x1674   :  { %1470 = vperm.xlu1 %2388, %v1107_v57   ;;  %1482 = vperm.xlu0 %2404, %v3137_v7  }
0x1678   :  { %2390 = vset.pattern.permute.xlu1 %v2583_v55  ;;  %2410 = vset.pattern.permute.xlu0 %v2584_v56 }
0x1679   :  { %1818 = vperm.xlu1 %2390, %v1107_v57   ;;  %1894 = vperm.xlu0 %2410, %v3137_v7  }
0x167d   :  { %2391 = vset.pattern.permute.xlu1 %v2585_v59  ;;  %2419 = vset.pattern.permute.xlu0 %v2579_v51 }
0x167e   :  { %1834 = vperm.xlu1 %2391, %v1107_v57   ;;  %1462 = vperm.xlu0 %2419, %v3151_v29  }
0x1682   :  { %2392 = vset.pattern.permute.xlu1 %v2586_v63  ;;  %2420 = vset.pattern.permute.xlu0 %v2581_v53 }
0x1683   :  { %1850 = vperm.xlu1 %2392, %v1107_v57   ;;  %1478 = vperm.xlu0 %2420, %v3151_v29  }
0x1687   :  { %2395 = vset.pattern.permute.xlu1 %v2587_v11  ;;  %2422 = vset.pattern.permute.xlu0 %v2583_v55 }
0x1688   :  { %1898 = vperm.xlu1 %2395, %v1107_v57   ;;  %1826 = vperm.xlu0 %2422, %v3151_v29  }
0x168c   :  { %2396 = vset.pattern.permute.xlu1 %v2588_v3  ;;  %2423 = vset.pattern.permute.xlu0 %v2585_v59 }
0x168d   :  { %1914 = vperm.xlu1 %2396, %v1107_v57   ;;  %1842 = vperm.xlu0 %2423, %v3151_v29  }
0x1691   :  { %2397 = vset.pattern.permute.xlu1 %v2573_v61  ;;  %2425 = vset.pattern.permute.xlu0 %v2582_v54 }
0x1692   :  { %1370 = vperm.xlu1 %2397, %v3137_v7   ;;  %1874 = vperm.xlu0 %2425, %v3151_v29  }
0x1696   :  { %2399 = vset.pattern.permute.xlu1 %v2578_v50  ;;  %2426 = vset.pattern.permute.xlu0 %v2584_v56 }
0x1697   :  { %1402 = vperm.xlu1 %2399, %v3137_v7   ;;  %1890 = vperm.xlu0 %2426, %v3151_v29  }
0x169b   :  { %2401 = vset.pattern.permute.xlu1 %v3438_v48  ;;  %1763 = vrot.lane.b32.xlu0 %v2930_v47, %s2572_s23 }
0x169c   :  { %1434 = vperm.xlu1 %2401, %v3137_v7   ;;  %2429 = vset.pattern.permute.xlu0 %v2588_v3 }
0x169f   :  { %1761 = vrot.lane.b32.xlu0 %v2932_v21, %s2572_s23 }
0x16a0   :  { %2402 = vset.pattern.permute.xlu1 %v3436_v49 }
0x16a1   :  { %1450 = vperm.xlu1 %2402, %v3137_v7  }
0x16a5   :  { %2403 = vset.pattern.permute.xlu1 %v2579_v51 }
0x16a6   :  { %1466 = vperm.xlu1 %2403, %v3137_v7  }
0x16a9   :  { %v1411_v47 = vpop.permute.xlu1 %1410  ;;  %v1361_v44 = vpop.permute.xlu0 %1360 }
0x16aa   :  { %2405 = vset.pattern.permute.xlu1 %v3437_v52 }
0x16ab   :  { %1814 = vperm.xlu1 %2405, %v3137_v7  }
0x16ae   :  { %v1427_v46 = vpop.permute.xlu1 %1426  ;;  %v1379_v53 = vpop.permute.xlu0 %1378 }
0x16af   :  { %v1486_v56 = vsel %vm1319_vm5, %v1361_v44, %v1379_v53  ;;  %2406 = vset.pattern.permute.xlu1 %v2583_v55 }
0x16b0   :  { %1830 = vperm.xlu1 %2406, %v3137_v7  }
0x16b3   :  { %v1443_v57 = vpop.permute.xlu1 %1442  ;;  %v1395_v0 = vpop.permute.xlu0 %1394 }
0x16b4   :  { %v1490_v51 = vsel %vm77_vm1, %v1486_v56, %v1395_v0  ;;  %2407 = vset.pattern.permute.xlu1 %v2585_v59 }
0x16b5   :  { %v1494_v49 = vsel %vm1328_vm6, %v1490_v51, %v1411_v47  ;;  %1846 = vperm.xlu1 %2407, %v3137_v7  }
0x16b6   :  { %v1498_v52 = vsel %vm1333_vm7, %v1494_v49, %v1427_v46 }
0x16b7   :  { %v1502_v48 = vsel %vm1338_vm8, %v1498_v52, %v1443_v57 }
0x16b8   :  { %v1459_v62 = vpop.permute.xlu1 %1458  ;;  %v1807_v44 = vpop.permute.xlu0 %1806 }
0x16b9   :  { %v1506_v55 = vsel %vm1343_vm9, %v1502_v48, %v1459_v62  ;;  %2408 = vset.pattern.permute.xlu1 %v2586_v63 }
0x16ba   :  { %1862 = vperm.xlu1 %2408, %v3137_v7  }
0x16bd   :  { %v1475_v53 = vpop.permute.xlu1 %1474  ;;  %v1871_v0 = vpop.permute.xlu0 %1870 }
0x16be   :  { %v1510_v59 = vsel %vm1348_vm10, %v1506_v55, %v1475_v53  ;;  %2409 = vset.pattern.permute.xlu1 %v2582_v54 }
0x16bf   :  { %v3215_v47 = vadd.f32 %v1510_v59, %v3006_v58  ;;  %1878 = vperm.xlu1 %2409, %v3137_v7  }
0x16c2   :  { %v1823_v49 = vpop.permute.xlu1 %1822  ;;  %v1887_v52 = vpop.permute.xlu0 %1886 }
0x16c3   :  { %v1930_v46 = vsel %vm1319_vm5, %v1807_v44, %v1823_v49  ;;  %2411 = vset.pattern.permute.xlu1 %v2587_v11 }
0x16c4   :  { %1910 = vperm.xlu1 %2411, %v3137_v7  }
0x16c7   :  { %v1839_v62 = vpop.permute.xlu1 %1838  ;;  %v1375_v48 = vpop.permute.xlu0 %1374 }
0x16c8   :  { %v1934_v56 = vsel %vm77_vm1, %v1930_v46, %v1839_v62  ;;  %2412 = vset.pattern.permute.xlu1 %v2588_v3  ;;  %v3443_v62 = vmov 6  }
0x16c9   :  { %1926 = vperm.xlu1 %2412, %v3137_v7  }
0x16cc   :  { %v1855_v58 = vpop.permute.xlu1 %1854  ;;  %v1423_v54 = vpop.permute.xlu0 %1422 }
0x16cd   :  { %v1938_v57 = vsel %vm1328_vm6, %v1934_v56, %v1855_v58  ;;  %2413 = vset.pattern.permute.xlu1 %v2573_v61 }
0x16ce   :  { %v1942_v51 = vsel %vm1333_vm7, %v1938_v57, %v1871_v0  ;;  %1365 = vperm.xlu1 %2413, %v3151_v29   ;;  %v3444_v57 = vmov 8  }
0x16cf   :  { %v1946_v44 = vsel %vm1338_vm8, %v1942_v51, %v1887_v52 }
0x16d1   :  { %v1903_v55 = vpop.permute.xlu1 %1902  ;;  %v1439_v53 = vpop.permute.xlu0 %1438 }
0x16d2   :  { %v1950_v59 = vsel %vm1343_vm9, %v1946_v44, %v1903_v55  ;;  %2414 = vset.pattern.permute.xlu1 %v2576_v19  ;;  %v3445_v55 = vmov 10  }
0x16d3   :  { %1382 = vperm.xlu1 %2414, %v3151_v29  }
0x16d6   :  { %v1919_v7 = vpop.permute.xlu1 %1918  ;;  %v1803_v49 = vpop.permute.xlu0 %1802 }
0x16d7   :  { %v1954_v46 = vsel %vm1348_vm10, %v1950_v59, %v1919_v7  ;;  %2415 = vset.pattern.permute.xlu1 %v2578_v50 }
0x16d8   :  { %1398 = vperm.xlu1 %2415, %v3151_v29  }
0x16db   :  { %v1867_v61 = vpop.permute.xlu0 %1866  ;;  %v1356_v0 = vpop.permute.xlu1 %1355 }
0x16dc   :  { %v1485_v52 = vsel %vm1319_vm5, %v1356_v0, %v1375_v48  ;;  %2416 = vset.pattern.permute.xlu1 %v3443_v62  ;;  %v3446_v62 = vmov 1  }
0x16dd   :  { %1414 = vperm.xlu1 %2416, %v3151_v29  }
0x16e0   :  { %v1391_v56 = vpop.permute.xlu1 %1390  ;;  %v1883_v19 = vpop.permute.xlu0 %1882 }
0x16e1   :  { %v1489_v58 = vsel %vm77_vm1, %v1485_v52, %v1391_v56  ;;  %2417 = vset.pattern.permute.xlu1 %v3444_v57 }
0x16e2   :  { %1430 = vperm.xlu1 %2417, %v3151_v29  }
0x16e5   :  { %v1407_v51 = vpop.permute.xlu1 %1406  ;;  %v1387_v50 = vpop.permute.xlu0 %1386 }
0x16e6   :  { %v1493_v44 = vsel %vm1328_vm6, %v1489_v58, %v1407_v51  ;;  %2418 = vset.pattern.permute.xlu1 %v3445_v55 }
0x16e7   :  { %v1497_v48 = vsel %vm1333_vm7, %v1493_v44, %v1423_v54  ;;  %1446 = vperm.xlu1 %2418, %v3151_v29  }
0x16e8   :  { %v1501_v59 = vsel %vm1338_vm8, %v1497_v48, %v1439_v53 }
0x16ea   :  { %v1455_v7 = vpop.permute.xlu1 %1454  ;;  %v1419_v0 = vpop.permute.xlu0 %1418 }
0x16eb   :  { %v1505_v52 = vsel %vm1343_vm9, %v1501_v59, %v1455_v7  ;;  %2421 = vset.pattern.permute.xlu1 %v3446_v62 }
0x16ec   :  { %1810 = vperm.xlu1 %2421, %v3151_v29  }
0x16ef   :  { %v1471_v56 = vpop.permute.xlu1 %1470  ;;  %v1483_v57 = vpop.permute.xlu0 %1482 }
0x16f0   :  { %v3250_v58 = vsel %vm1348_vm10, %v1505_v52, %v1471_v56  ;;  %2424 = vset.pattern.permute.xlu1 %v2586_v63 }
0x16f1   :  { %1858 = vperm.xlu1 %2424, %v3151_v29  }
0x16f4   :  { %v1819_v54 = vpop.permute.xlu1 %1818  ;;  %v3254_v51 = vpop.permute.xlu0 %1894 }
0x16f5   :  { %v1929_v53 = vsel %vm1319_vm5, %v1803_v49, %v1819_v54  ;;  %2427 = vset.pattern.permute.xlu1 %v2587_v11 }
0x16f6   :  { %1906 = vperm.xlu1 %2427, %v3151_v29  }
0x16f9   :  { %v1835_v44 = vpop.permute.xlu1 %1834  ;;  %v3259_v55 = vpop.permute.xlu0 %1462 }
0x16fa   :  { %v1933_v48 = vsel %vm77_vm1, %v1929_v53, %v1835_v44  ;;  %2428 = vset.pattern.permute.xlu1 %v2588_v3 }
0x16fb   :  { %1922 = vperm.xlu1 %2428, %v3151_v29  }
0x16fe   :  { %v1851_v63 = vpop.permute.xlu1 %1850  ;;  %v3264_v59 = vpop.permute.xlu0 %1478 }
0x16ff   :  { %v1937_v7 = vsel %vm1328_vm6, %v1933_v48, %v1851_v63  ;;  %1737 = vrot.lane.b32.xlu1 %v2932_v21, %s2571_s22 }
0x1700   :  { %v1941_v11 = vsel %vm1333_vm7, %v1937_v7, %v1867_v61 }
0x1701   :  { %v1945_v49 = vsel %vm1338_vm8, %v1941_v11, %v1883_v19  ;;  %v1794_v19 = vsel %vm1343_vm9, %v3113_v45, %v3194_v43 }
0x1703   :  { %v1899_v52 = vpop.permute.xlu1 %1898  ;;  %1749 = vrot.lane.b32.xlu1 %v2932_v21, %s2567_s5  ;;  %v3273_v62 = vpop.permute.xlu0 %1826 }
0x1704   :  { %v1949_v3 = vsel %vm1343_vm9, %v1945_v49, %v1899_v52 }
0x1708   :  { %v1915_v29 = vpop.permute.xlu1 %1914  ;;  %v3276_v56 = vpop.permute.xlu0 %1842 }
0x1709   :  { %v3279_v54 = vsel %vm1348_vm10, %v1949_v3, %v1915_v29 }
0x170a   :  { %3447 = vst [vmem:[#allocation14_spill] sm:$0xff] %v3279_v54 }
0x170d   :  { %v1371_v53 = vpop.permute.xlu1 %1370  ;;  %v3281_v44 = vpop.permute.xlu0 %1874 }
0x170e   :  { %v1488_v52 = vsel %vm1319_vm5, %v1371_v53, %v1387_v50 }
0x1712   :  { %v1403_v61 = vpop.permute.xlu1 %1402  ;;  %v3283_v48 = vpop.permute.xlu0 %1890 }
0x1713   :  { %v1492_v3 = vsel %vm77_vm1, %v1488_v52, %v1403_v61 }
0x1714   :  { %v1496_v54 = vsel %vm1328_vm6, %v1492_v3, %v1419_v0  ;;  %v1776_v3 = vsel %vm1319_vm5, %v2934_v22, %v3083_v24 }
0x1716   :  { %v1764_v63 = vpop.permute.xlu0 %1763 }
0x1717   :  { %v1798_v7 = vsel %vm1348_vm10, %v1794_v19, %v1764_v63  ;;  %v1435_v11 = vpop.permute.xlu1 %1434 }
0x1718   :  { %v3289_v49 = vadd.f32 %v1954_v46, %v1798_v7  ;;  %v1500_v42 = vsel %vm1333_vm7, %v1496_v54, %v1435_v11  ;;  %v3448_v7 = vmov 0.0  }
0x171c   :  { %v1451_v29 = vpop.permute.xlu1 %1450 }
0x171d   :  { %v1504_v40 = vsel %vm1338_vm8, %v1500_v42, %v1451_v29 }
0x1721   :  { %v1467_v41 = vpop.permute.xlu1 %1466 }
0x1722   :  { %v1508_v45 = vsel %vm1343_vm9, %v1504_v40, %v1467_v41  ;;  %v1322_v40 = vsel %vm1319_vm5, %v2928_v16, %v3052_v5  ;;  %v1780_v16 = vsel %vm77_vm1, %v1776_v3, %v3085_v25 }
0x1723   :  { %v1512_v43 = vsel %vm1348_vm10, %v1508_v45, %v1483_v57  ;;  %v1326_v57 = vsel %vm77_vm1, %v1322_v40, %v3061_v10  ;;  %v1784_v5 = vsel %vm1328_vm6, %v1780_v16, %v3091_v28 }
0x1724   :  { %v1516_v19 = vadd.f32 %v1512_v43, %v3011_v60  ;;  %v1320_v60 = vsel %vm1319_vm5, %v2912_v18, %v3047_v1  ;;  %v1331_v43 = vsel %vm1328_vm6, %v1326_v57, %v3065_v12 }
0x1725   :  { %v1324_v29 = vsel %vm77_vm1, %v1320_v60, %v3056_v9  ;;  %v1336_v1 = vsel %vm1333_vm7, %v1331_v43, %v3069_v4  ;;  %v3450_v43 = vld [vmem:[#allocation11_spill] sm:$0xff] }
0x1726   :  { %2478 = vtanh.f32 %v1516_v19  ;;  %v1815_v46 = vpop.permute.xlu1 %1814  ;;  %v1329_v18 = vsel %vm1328_vm6, %v1324_v29, %v3063_v2  ;;  %v1341_v10 = vsel %vm1338_vm8, %v1336_v1, %v3073_v15  ;;  %v1788_v2 = vsel %vm1333_vm7, %v1784_v5, %v3093_v30  ;;  %v3451_v1 = vld [vmem:[#allocation13_spill] sm:$0xff] }
0x1727   :  { %v1334_v9 = vsel %vm1333_vm7, %v1329_v18, %v3067_v13  ;;  %v1346_v15 = vsel %vm1343_vm9, %v1341_v10, %v3077_v17  ;;  %v1792_v30 = vsel %vm1338_vm8, %v1788_v2, %v3095_v31  ;;  %v1775_v17 = vsel %vm1319_vm5, %v2940_v23, %v3087_v26  ;;  %v1762_v10 = vpop.permute.xlu0 %1761  ;;  %v3452_v2 = vld [vmem:[#allocation14_spill] sm:$0xff] }
0x1728   :  { %v1339_v28 = vsel %vm1338_vm8, %v1334_v9, %v3071_v14  ;;  %v1779_v23 = vsel %vm77_vm1, %v1775_v17, %v3089_v27 }
0x1729   :  { %v1344_v14 = vsel %vm1343_vm9, %v1339_v28, %v3075_v6 }
0x172b   :  { %v1831_v63 = vpop.permute.xlu1 %1830 }
0x172c   :  { %v1932_v12 = vsel %vm1319_vm5, %v1815_v46, %v1831_v63 }
0x1730   :  { %v1847_v50 = vpop.permute.xlu1 %1846 }
0x1731   :  { %v1936_v25 = vsel %vm77_vm1, %v1932_v12, %v1847_v50 }
0x1733   :  { %v2479_v53 = vpop.eup %2478 }
0x1734   :  { %2300 = vmatpush3.msra.mxu1 %v2479_v53 }
0x1735   :  { %v1863_v61 = vpop.permute.xlu1 %1862  ;;  %2301 = vmatprep.subr.mxu1 %v3448_v7 }
0x1736   :  { %v1940_v19 = vsel %vm1328_vm6, %v1936_v25, %v1863_v61 }
0x173a   :  { %v1879_v0 = vpop.permute.xlu1 %1878 }
0x173b   :  { %v1944_v46 = vsel %vm1333_vm7, %v1940_v19, %v1879_v0 }
0x173c   :  { %v1948_v0 = vsel %vm1338_vm8, %v1944_v46, %v3254_v51 }
0x173f   :  { %v1911_v54 = vpop.permute.xlu1 %1910 }
0x1740   :  { %v1952_v6 = vsel %vm1343_vm9, %v1948_v0, %v1911_v54 }
0x1744   :  { %v1927_v11 = vpop.permute.xlu1 %1926 }
0x1749   :  { %v1366_v42 = vpop.permute.xlu1 %1365 }
0x174e   :  { %v1383_v52 = vpop.permute.xlu1 %1382 }
0x174f   :  { %v1487_v24 = vsel %vm1319_vm5, %v1366_v42, %v1383_v52  ;;  %v1351_v42 = vsel %vm1348_vm10, %v1346_v15, %v3081_v20  ;;  %v1796_v52 = vsel %vm1343_vm9, %v1792_v30, %v3099_v34  ;;  %v1956_v20 = vsel %vm1348_vm10, %v1952_v6, %v1927_v11 }
0x1750   :  { %v1800_v51 = vsel %vm1348_vm10, %v1796_v52, %v3159_v32 }
0x1751   :  { %v1960_v34 = vadd.f32 %v1956_v20, %v1800_v51 }
0x1753   :  { %v1399_v41 = vpop.permute.xlu1 %1398 }
0x1754   :  { %v1491_v4 = vsel %vm77_vm1, %v1487_v24, %v1399_v41 }
0x1758   :  { %v1415_v45 = vpop.permute.xlu1 %1414 }
0x1759   :  { %v1495_v13 = vsel %vm1328_vm6, %v1491_v4, %v1415_v45 }
0x175d   :  { %v1431_v22 = vpop.permute.xlu1 %1430 }
0x175e   :  { %v1499_v63 = vsel %vm1333_vm7, %v1495_v13, %v1431_v22 }
0x1762   :  { %v1447_v53 = vpop.permute.xlu1 %1446 }
0x1763   :  { %v1503_v50 = vsel %vm1338_vm8, %v1499_v63, %v1447_v53  ;;  %v2040_v63 = vld [vmem:[%s3425_s2] sm:$0x3] }
0x1764   :  { %v1507_v61 = vsel %vm1343_vm9, %v1503_v50, %v3259_v55  ;;  %v1349_v55 = vsel %vm1348_vm10, %v1344_v14, %v3079_v8 }
0x1765   :  { %v1511_v31 = vsel %vm1348_vm10, %v1507_v61, %v3264_v59  ;;  %v1513_v26 = vadd.f32 %v3250_v58, %v1349_v55  ;;  %v1783_v59 = vsel %vm1328_vm6, %v1779_v23, %v3097_v33 }
0x1766   :  { %v1515_v40 = vadd.f32 %v1511_v31, %v1351_v42  ;;  %v1787_v27 = vsel %vm1333_vm7, %v1783_v59, %v3101_v35 }
0x1767   :  { %v1811_v41 = vpop.permute.xlu1 %1810 }
0x1768   :  { %2480 = vtanh.f32 %v1515_v40  ;;  %v1931_v8 = vsel %vm1319_vm5, %v1811_v41, %v3273_v62  ;;  %v1773_v62 = vsel %vm1319_vm5, %v2932_v21, %v3103_v36 }
0x1769   :  { %2482 = vtanh.f32 %v3215_v47  ;;  %v1935_v58 = vsel %vm77_vm1, %v1931_v8, %v3276_v56  ;;  %v1791_v47 = vsel %vm1338_vm8, %v1787_v27, %v3108_v39  ;;  %v1777_v29 = vsel %vm77_vm1, %v1773_v62, %v3166_v37 }
0x176a   :  { %2484 = vtanh.f32 %v1513_v26  ;;  %v1795_v35 = vsel %vm1343_vm9, %v1791_v47, %v3173_v38  ;;  %v1521_v38 = vld [vmem:[%s3432_s9] sm:$0x1]  ;;  %v1781_v16 = vsel %vm1328_vm6, %v1777_v29, %v3450_v43 }
0x176b   :  { %2486 = vtanh.f32 %v1960_v34  ;;  %v1785_v5 = vsel %vm1333_vm7, %v1781_v16, %v3451_v1 }
0x176c   :  { %v1859_v54 = vpop.permute.xlu1 %1858 }
0x176d   :  { %v1939_v32 = vsel %vm1328_vm6, %v1935_v58, %v1859_v54 }
0x176e   :  { %v1943_v33 = vsel %vm1333_vm7, %v1939_v32, %v3281_v44  ;;  %v3449_v44 = vld [vmem:[#allocation12_spill] sm:$0xff] }
0x176f   :  { %v1947_v56 = vsel %vm1338_vm8, %v1943_v33, %v3283_v48  ;;  %v1799_v45 = vsel %vm1348_vm10, %v1795_v35, %v3449_v44 }
0x1771   :  { %v1907_v11 = vpop.permute.xlu1 %1906 }
0x1772   :  { %v1951_v57 = vsel %vm1343_vm9, %v1947_v56, %v1907_v11 }
0x1775   :  { %v2481_v60 = vpop.eup %2480 }
0x1776   :  { %2302 = vmatpush3.msra.mxu1 %v2481_v60  ;;  %v1923_v3 = vpop.permute.xlu1 %1922  ;;  %v2483_v39 = vpop.eup %2482 }
0x1777   :  { %v1955_v21 = vsel %vm1348_vm10, %v1951_v57, %v1923_v3  ;;  %2303 = vmatprep.subr.mxu1 %v3448_v7  ;;  %v2485_v48 = vpop.eup %2484 }
0x1778   :  { %v1959_v36 = vadd.f32 %v1955_v21, %v1799_v45  ;;  %2304 = vmatpush3.msra.mxu1 %v2483_v39  ;;  %v2487_v18 = vpop.eup %2486 }
0x1779   :  { %2305 = vmatprep.subr.mxu1 %v3448_v7 }
0x177a   :  { %2488 = vtanh.f32 %v1959_v36  ;;  %2306 = vmatpush3.msra.mxu1 %v2485_v48  ;;  %v1738_v37 = vpop.permute.xlu1 %1737 }
0x177b   :  { %2324 = vmatprep.subr.mxu1 %v3448_v7  ;;  %2308 = vmatmul.mubr.msk.f32.vlgmr.msra.gmra.mxu1 %vm77_vm1, %v1521_v38  ;;  %2490 = vtanh.f32 %v3289_v49  ;;  %v1789_v22 = vsel %vm1338_vm8, %v1785_v5, %v1738_v37 }
0x177c   :  { %2325 = vmatpush3.msra.mxu1 %v2487_v18  ;;  %2332 = vmatprep.mubr.msk.f32.mxu1 %vm2565_vm0, %v3448_v7 }
0x177d   :  { %2326 = vmatprep.subr.mxu1 %v3448_v7 }
0x177e   :  { %v1750_v9 = vpop.permute.xlu1 %1749 }
0x177f   :  { %v1793_v12 = vsel %vm1343_vm9, %v1789_v22, %v1750_v9 }
0x1780   :  { %v1797_v24 = vsel %vm1348_vm10, %v1793_v12, %v1762_v10 }
0x1781   :  { %v1957_v25 = vadd.f32 %v3452_v2, %v1797_v24 }
0x1783   :  { %2492 = vtanh.f32 %v1957_v25 }
0x1787   :  { %v2489_v49 = vpop.eup %2488 }
0x1788   :  { %2327 = vmatpush3.msra.mxu1 %v2489_v49  ;;  %v2491_v4 = vpop.eup %2490 }
0x1789   :  { %2328 = vmatprep.subr.mxu1 %v3448_v7 }
0x178a   :  { %2329 = vmatpush3.msra.mxu1 %v2491_v4 }
0x178b   :  { %2330 = vmatprep.subr.mxu1 %v3448_v7 }
0x1790   :  { %v2493_v28 = vpop.eup %2492 }
0x1791   :  { %2331 = vmatpush3.msra.mxu1 %v2493_v28 }
0x1792   :  { %2333 = vmatmul.mubr.msk.f32.vlgmr.msra.gmra.mxu1 %vm77_vm1, %v1521_v38 }
0x183b   :  { %v1591_v19 = vpop.f32.mrf.mxu1 }
0x183d   :  { %v2309_v13 = vpop.f32.mrf.mxu1 }
0x1852   :  { %v2031_v15 = vpop.f32.mrf.mxu1 }
0x1853   :  { %v2036_v46 = vrot.slane %v2031_v15, 7 }
0x1854   :  { %v2334_v53 = vpop.f32.mrf.mxu1 }
0x1855   :  { %v2039_v30 = vsel %vm2038_vm11, %v1591_v19, %v2036_v46 }
0x1856   :  { %v2041_v50 = vadd.f32 %v2040_v63, %v2039_v30 }
0x1858   :  { %2042 = vst [vmem:[#allocation7] sm:$0x3] %v2041_v50 }
0x1859   :  { %2545 = shalt.err (!%p2542_p0)
}
0x185a   :  { %2052 = dma.vmem_to_hbm [thread:$0]  %s2050_s25, 32, %s3433_s10, [#allocation4]  }
0x185b   :  { %2558 = dma.done.wait [#allocation4], 32  }
0x185c   :  { %2559 = vsyncadd [#allocation4], 4294967264 }
0x185d   :  { %2056 = vsyncpa [#allocation3], 1 }
0x185e   :  { %2057 = vsyncpa [#allocation6], 1 }
0x185f   :  { %2058 = vsyncpa [#allocation4], 1 }

</bundles_post_ra>
